<compile_context>
chip_gen: v7x
topology: tpu7x:2x2x1
jax: 0.10.0
libtpu: 0.0.40
codegen_flags: <defaults>
</compile_context>

<pallas_src>
import math
import functools

import jax
import jax.numpy as jnp
from jax.experimental import pallas as pl
from jax.experimental.pallas import tpu as pltpu


# ---------------------------------------------------------------------------
# Parameter preparation (host side)
# ---------------------------------------------------------------------------
def _prepare_params(w_q, w_kv, w_c, n_heads):
    """Transpose PyTorch-layout weights to (in, out), split kv, fold the
    1/sqrt(D) scale into w_q, reshape w_c to head-major (H, D, C), cast bf16."""
    C = w_q.shape[0]
    D = C // n_heads
    scale = 1.0 / math.sqrt(D)
    wq_t = (w_q.T * scale).astype(jnp.bfloat16)                    # (C, C)
    wk_t = w_kv[:C].T.astype(jnp.bfloat16)                         # (C, C)
    wv_t = w_kv[C:].T.astype(jnp.bfloat16)                         # (C, C)
    wc_hdc = w_c.T.reshape(n_heads, D, C).astype(jnp.bfloat16)     # (H, D, C)
    return wq_t, wk_t, wv_t, wc_hdc


# ---------------------------------------------------------------------------
# Generation-aware sizing helpers
# ---------------------------------------------------------------------------
def _round_up(x: int, m: int) -> int:
    return ((x + m - 1) // m) * m


def _vmem_capacity_bytes() -> int:
    try:
        return int(pltpu.get_tpu_info().vmem_capacity_bytes)
    except Exception:
        return 64 * 1024 * 1024  # conservative (v7x-sized) fallback


def _estimate_step_vmem(tq, T_kv, C, H, out_bytes) -> int:
    """Rough per-step VMEM footprint (weights, pipelined blocks, scratch,
    score tensors, intermediates). Lane dims padded to >=128."""
    D = C // H
    Dp = max(D, 128)
    bf = 2
    w = 4 * C * C * bf                        # single-buffered weights
    xq = 2 * tq * C * bf                      # double-buffered q tile
    xkv = 2 * T_kv * C * bf                   # double-buffered kv block
    out = 2 * tq * C * out_bytes              # double-buffered out tile
    kv_sc = 2 * H * T_kv * Dp * bf            # head-major K/V scratch
    scores = 2 * H * tq * T_kv * 4            # s and p (f32)
    interm = H * tq * Dp * (4 + 2) + tq * C * (4 + 2)
    return int((w + xq + xkv + out + kv_sc + scores + interm) * 1.15)


def _pick_q_tile(T_q: int, max_tile: int) -> int:
    """q tile: multiple of 16 (bf16 sublane tile), capped at max_tile."""
    return min(_round_up(max(T_q, 1), 16), max_tile)


# ---------------------------------------------------------------------------
# Kernel
# ---------------------------------------------------------------------------
def _mhca_kernel(xq_ref, xkv_ref, wqt_ref, wkt_ref, wvt_ref, wc_ref, o_ref,
                 k_scratch, v_scratch, *, n_heads: int, emb_dim: int):
    """One grid step == one (batch element, q tile).

    xq_ref  : (1, tq,   C) bf16
    xkv_ref : (1, T_kv, C) bf16   (resident across q tiles of a batch)
    wqt/wkt/wvt_ref : (C, C) bf16, (in, out) layout, scale folded into wqt
    wc_ref  : (H, D, C) bf16      (head-major output projection)
    o_ref   : (1, tq, C)
    k_scratch/v_scratch : (H, T_kv, D) bf16 VMEM, K/V cache for current batch.
    """
    C = emb_dim
    H = n_heads
    D = C // H

    # ---- K/V projection: once per batch element (first q tile only). ------
    @pl.when(pl.program_id(1) == 0)
    def _compute_kv():
        xkv = xkv_ref[0]                                            # (T_kv, C)
        T_kv = xkv.shape[0]
        k = jnp.dot(xkv, wkt_ref[...],
                    preferred_element_type=jnp.float32).astype(jnp.bfloat16)
        v = jnp.dot(xkv, wvt_ref[...],
                    preferred_element_type=jnp.float32).astype(jnp.bfloat16)
        # Head-major relayout amortized over all q tiles of this batch.
        k_scratch[...] = jnp.transpose(k.reshape(T_kv, H, D), (1, 0, 2))
        v_scratch[...] = jnp.transpose(v.reshape(T_kv, H, D), (1, 0, 2))

    # ---- Q projection for this tile (scale already folded into wqt). ------
    xq = xq_ref[0]                                                  # (tq, C)
    tq = xq.shape[0]
    q = jnp.dot(xq, wqt_ref[...],
                preferred_element_type=jnp.float32).astype(jnp.bfloat16)
    qh = jnp.transpose(q.reshape(tq, H, D), (1, 0, 2))              # (H, tq, D)

    # ---- Attention (single-pass softmax; see TODO for flash KV tiling). ---
    s = jnp.einsum("hqd,hkd->hqk", qh, k_scratch[...],
                   preferred_element_type=jnp.float32)              # (H, tq, T_kv)
    m = jnp.max(s, axis=-1, keepdims=True)
    p = jnp.exp(s - m)
    p = p * pl.reciprocal(jnp.sum(p, axis=-1, keepdims=True), approx=True)
    y = jnp.einsum("hqk,hkd->hqd", p.astype(jnp.bfloat16), v_scratch[...],
                   preferred_element_type=jnp.float32)              # (H, tq, D)
    y_bf = y.astype(jnp.bfloat16)

    # ---- Output projection: accumulate per-head partials (no head-merge
    # transpose); wc_ref[h] is the (D, C) slab for head h. ------------------
    out = jnp.dot(y_bf[0], wc_ref[0], preferred_element_type=jnp.float32)
    for h in range(1, H):
        out = out + jnp.dot(y_bf[h], wc_ref[h],
                            preferred_element_type=jnp.float32)
    o_ref[0] = out.astype(o_ref.dtype)


# ---------------------------------------------------------------------------
# Wrapper
# ---------------------------------------------------------------------------
def multi_head_cross_attention(x_q, x_kv, q_tok_mask, kv_tok_mask,
                               w_q, w_kv, w_c, *, n_heads: int,
                               q_tile: int | None = None):
    """Pallas forward. Masks are accepted for interface parity but unused —
    this matches the PyTorch forward, which passes attn_mask=None to SDPA."""
    del q_tok_mask, kv_tok_mask  # not applied in the reference forward
    B, T_q, C = x_q.shape
    _, T_kv, _ = x_kv.shape
    assert C % n_heads == 0
    H = n_heads
    D = C // H
    out_bytes = jnp.dtype(x_q.dtype).itemsize

    # Generation-aware VMEM budget / tile sizing.
    cap = _vmem_capacity_bytes()
    vmem_limit = min(int(cap * 3 // 4), 112 * 1024 * 1024)
    max_tile = 256 if cap <= 64 * 1024 * 1024 else 512

    if q_tile is not None:
        tq = q_tile
    else:
        tq = _pick_q_tile(T_q, max_tile)
        while tq > 16 and _estimate_step_vmem(tq, T_kv, C, H, out_bytes) > vmem_limit:
            tq = max(16, _round_up(tq // 2, 16))

    T_q_pad = _round_up(T_q, tq)
    n_q_tiles = T_q_pad // tq

    wq_t, wk_t, wv_t, wc_hdc = _prepare_params(w_q, w_kv, w_c, n_heads)
    xq_bf = x_q.astype(jnp.bfloat16)
    xkv_bf = x_kv.astype(jnp.bfloat16)
    if T_q_pad != T_q:
        xq_bf = jnp.pad(xq_bf, ((0, 0), (0, T_q_pad - T_q), (0, 0)))

    kernel = functools.partial(_mhca_kernel, n_heads=n_heads, emb_dim=C)

    # Grid-invariant weights: single-buffer (their block index never changes).
    w_cc_spec = lambda: pl.BlockSpec((C, C), lambda b, qi: (0, 0),
                                     pipeline_mode=pl.Buffered(1))
    wc_spec = pl.BlockSpec((H, D, C), lambda b, qi: (0, 0, 0),
                           pipeline_mode=pl.Buffered(1))

    out = pl.pallas_call(
        kernel,
        out_shape=jax.ShapeDtypeStruct((B, T_q_pad, C), x_q.dtype),
        grid_spec=pltpu.PrefetchScalarGridSpec(
            num_scalar_prefetch=0,
            grid=(B, n_q_tiles),
            in_specs=[
                pl.BlockSpec((1, tq, C), lambda b, qi: (b, qi, 0)),   # x_q tile
                pl.BlockSpec((1, T_kv, C), lambda b, qi: (b, 0, 0)),  # x_kv (per batch)
                w_cc_spec(),                                          # wq_t (scaled)
                w_cc_spec(),                                          # wk_t
                w_cc_spec(),                                          # wv_t
                wc_spec,                                              # wc (H, D, C)
            ],
            out_specs=pl.BlockSpec((1, tq, C), lambda b, qi: (b, qi, 0)),
            scratch_shapes=[
                pltpu.VMEM((H, T_kv, D), jnp.bfloat16),               # K cache
                pltpu.VMEM((H, T_kv, D), jnp.bfloat16),               # V cache
            ],
        ),
        compiler_params=pltpu.CompilerParams(
            # B stays parallel (megacore sharding on 2-TC parts); qi must be
            # sequential because the K/V scratch is filled at qi == 0.
            dimension_semantics=("parallel", "arbitrary"),
            vmem_limit_bytes=vmem_limit,
        ),
    )(xq_bf, xkv_bf, wq_t, wk_t, wv_t, wc_hdc)

    if T_q_pad != T_q:
        out = out[:, :T_q]
    return out


# ---------------------------------------------------------------------------
# Plain-JAX reference (same bf16-quantized weights, f32 math)
# ---------------------------------------------------------------------------
def _reference(x_q, x_kv, w_q, w_kv, w_c, n_heads):
    B, T_q, C = x_q.shape
    _, T_kv, _ = x_kv.shape
    H = n_heads
    D = C // H
    wq_t, wk_t, wv_t, wc_hdc = _prepare_params(w_q, w_kv, w_c, n_heads)
    xq = x_q.astype(jnp.bfloat16).astype(jnp.float32)
    xkv = x_kv.astype(jnp.bfloat16).astype(jnp.float32)
    wq_t = wq_t.astype(jnp.float32)
    wk_t = wk_t.astype(jnp.float32)
    wv_t = wv_t.astype(jnp.float32)
    wc_t = wc_hdc.astype(jnp.float32).reshape(C, C)
    q = (xq @ wq_t).reshape(B, T_q, H, D).transpose(0, 2, 1, 3)   # scale folded
    k = (xkv @ wk_t).reshape(B, T_kv, H, D).transpose(0, 2, 1, 3)
    v = (xkv @ wv_t).reshape(B, T_kv, H, D).transpose(0, 2, 1, 3)
    s = jnp.einsum("bhqd,bhkd->bhqk", q, k)
    p = jax.nn.softmax(s, axis=-1)
    y = jnp.einsum("bhqk,bhkd->bhqd", p, v)
    y = y.transpose(0, 2, 1, 3).reshape(B, T_q, C)
    return y @ wc_t


if __name__ == "__main__":
    # Small shapes consistent with the module interface.
    B, T_q, T_kv, C, n_heads = 2, 8, 16, 32, 4

    key = jax.random.PRNGKey(0)
    k1, k2, k3, k4, k5 = jax.random.split(key, 5)

    x_q = jax.random.normal(k1, (B, T_q, C), dtype=jnp.float32)
    x_kv = jax.random.normal(k2, (B, T_kv, C), dtype=jnp.float32)
    q_tok_mask = jnp.ones((B, T_q), dtype=bool)
    kv_tok_mask = jnp.ones((B, T_kv), dtype=bool)

    # Deterministic parameter init (PyTorch Linear layout: [out, in], no bias).
    w_q = jax.random.normal(k3, (C, C), dtype=jnp.float32) * (1.0 / math.sqrt(C))
    w_kv = jax.random.normal(k4, (2 * C, C), dtype=jnp.float32) * (1.0 / math.sqrt(C))
    w_c = jax.random.normal(k5, (C, C), dtype=jnp.float32) * (1.0 / math.sqrt(C))

    out = multi_head_cross_attention(
        x_q, x_kv, q_tok_mask, kv_tok_mask, w_q, w_kv, w_c, n_heads=n_heads)
    out = jax.block_until_ready(out)

    ref = _reference(x_q, x_kv, w_q, w_kv, w_c, n_heads)
    assert out.shape == (B, T_q, C)
    # bf16 MXU operands + approx reciprocal -> compare with bf16-appropriate tol.
    assert jnp.allclose(out, ref, atol=2e-2, rtol=2e-2), "mismatch vs reference"

    print("KERNEL_OK")
</pallas_src>

<mosaic_0001>
module attributes {stable_mosaic.version = 11 : i64} {
  func.func @_mhca_kernel(%arg0: i32, %arg1: i32, %arg2: memref<1x16x32xbf16, #tpu.memory_space<vmem>>, %arg3: memref<1x16x32xbf16, #tpu.memory_space<vmem>>, %arg4: memref<32x32xbf16, #tpu.memory_space<vmem>>, %arg5: memref<32x32xbf16, #tpu.memory_space<vmem>>, %arg6: memref<32x32xbf16, #tpu.memory_space<vmem>>, %arg7: memref<4x8x32xbf16, #tpu.memory_space<vmem>>, %arg8: memref<1x16x32xf32, #tpu.memory_space<vmem>>, %arg9: memref<4x16x8xbf16, #tpu.memory_space<vmem>>, %arg10: memref<4x16x8xbf16, #tpu.memory_space<vmem>>) attributes {dimension_semantics = [#tpu.dimension_semantics<parallel>, #tpu.dimension_semantics<arbitrary>], iteration_bounds = array<i64: 2, 1>, scalar_prefetch = 0 : i64, scratch_operands = 2 : i64, tpu.core_type = #tpu.core_type<tc>, window_params = [{transform_indices = @transform_0, window_bounds = array<i64: 1, 16, 32>}, {transform_indices = @transform_1, window_bounds = array<i64: 1, 16, 32>}, {pipeline_mode = #tpu.pipeline_mode<synchronous>, transform_indices = @transform_2, window_bounds = array<i64: 32, 32>}, {pipeline_mode = #tpu.pipeline_mode<synchronous>, transform_indices = @transform_3, window_bounds = array<i64: 32, 32>}, {pipeline_mode = #tpu.pipeline_mode<synchronous>, transform_indices = @transform_4, window_bounds = array<i64: 32, 32>}, {pipeline_mode = #tpu.pipeline_mode<synchronous>, transform_indices = @transform_5, window_bounds = array<i64: 4, 8, 32>}, {transform_indices = @transform_6, window_bounds = array<i64: 1, 16, 32>}]} {
    %c0_i32 = arith.constant 0 : i32
    %0 = arith.cmpi eq, %arg1, %c0_i32 : i32
    %1 = arith.extui %0 : i1 to i32
    %c0_i32_0 = arith.constant 0 : i32
    %2 = arith.cmpi ne, %1, %c0_i32_0 : i32
    scf.if %2 {
      %c0_31 = arith.constant 0 : index
      %c0_32 = arith.constant 0 : index
      %c0_33 = arith.constant 0 : index
      %52 = vector.load %arg3[%c0_31, %c0_32, %c0_33] : memref<1x16x32xbf16, #tpu.memory_space<vmem>>, vector<1x16x32xbf16>
      %53 = vector.shape_cast %52 : vector<1x16x32xbf16> to vector<16x32xbf16>
      %c0_34 = arith.constant 0 : index
      %c0_35 = arith.constant 0 : index
      %54 = vector.load %arg5[%c0_34, %c0_35] : memref<32x32xbf16, #tpu.memory_space<vmem>>, vector<32x32xbf16>
      %cst_36 = arith.constant dense<0.000000e+00> : vector<16x32xf32>
      %55 = tpu.matmul %53, %54, %cst_36 {dimension_numbers = #tpu.dot_dimension_numbers<[1], [0], [0], [1], [0, 0, 1, 1], [], []>} : vector<16x32xbf16>, vector<32x32xbf16>, vector<16x32xf32> -> vector<16x32xf32>
      %56 = arith.truncf %55 : vector<16x32xf32> to vector<16x32xbf16>
      %c0_37 = arith.constant 0 : index
      %c0_38 = arith.constant 0 : index
      %57 = vector.load %arg6[%c0_37, %c0_38] : memref<32x32xbf16, #tpu.memory_space<vmem>>, vector<32x32xbf16>
      %cst_39 = arith.constant dense<0.000000e+00> : vector<16x32xf32>
      %58 = tpu.matmul %53, %57, %cst_39 {dimension_numbers = #tpu.dot_dimension_numbers<[1], [0], [0], [1], [0, 0, 1, 1], [], []>} : vector<16x32xbf16>, vector<32x32xbf16>, vector<16x32xf32> -> vector<16x32xf32>
      %59 = arith.truncf %58 : vector<16x32xf32> to vector<16x32xbf16>
      %60 = vector.shape_cast %56 : vector<16x32xbf16> to vector<16x4x8xbf16>
      %61 = tpu.transpose %60, [1, 0, 2] : vector<16x4x8xbf16> -> vector<4x16x8xbf16>
      %c0_40 = arith.constant 0 : index
      %c0_41 = arith.constant 0 : index
      %c0_42 = arith.constant 0 : index
      %62 = vector.load %arg9[%c0_40, %c0_41, %c0_42] : memref<4x16x8xbf16, #tpu.memory_space<vmem>>, vector<4x16x8xbf16>
      tpu.vector_store %arg9[%c0_40, %c0_41, %c0_42], %61 {strides = array<i32>} : memref<4x16x8xbf16, #tpu.memory_space<vmem>>, vector<4x16x8xbf16>,
      %63 = vector.shape_cast %59 : vector<16x32xbf16> to vector<16x4x8xbf16>
      %64 = tpu.transpose %63, [1, 0, 2] : vector<16x4x8xbf16> -> vector<4x16x8xbf16>
      %c0_43 = arith.constant 0 : index
      %c0_44 = arith.constant 0 : index
      %c0_45 = arith.constant 0 : index
      %65 = vector.load %arg10[%c0_43, %c0_44, %c0_45] : memref<4x16x8xbf16, #tpu.memory_space<vmem>>, vector<4x16x8xbf16>
      tpu.vector_store %arg10[%c0_43, %c0_44, %c0_45], %64 {strides = array<i32>} : memref<4x16x8xbf16, #tpu.memory_space<vmem>>, vector<4x16x8xbf16>,
    } else {
    }
    %c0 = arith.constant 0 : index
    %c0_1 = arith.constant 0 : index
    %c0_2 = arith.constant 0 : index
    %3 = vector.load %arg2[%c0, %c0_1, %c0_2] : memref<1x16x32xbf16, #tpu.memory_space<vmem>>, vector<1x16x32xbf16>
    %4 = vector.shape_cast %3 : vector<1x16x32xbf16> to vector<16x32xbf16>
    %c0_3 = arith.constant 0 : index
    %c0_4 = arith.constant 0 : index
    %5 = vector.load %arg4[%c0_3, %c0_4] : memref<32x32xbf16, #tpu.memory_space<vmem>>, vector<32x32xbf16>
    %cst = arith.constant dense<0.000000e+00> : vector<16x32xf32>
    %6 = tpu.matmul %4, %5, %cst {dimension_numbers = #tpu.dot_dimension_numbers<[1], [0], [0], [1], [0, 0, 1, 1], [], []>} : vector<16x32xbf16>, vector<32x32xbf16>, vector<16x32xf32> -> vector<16x32xf32>
    %7 = arith.truncf %6 : vector<16x32xf32> to vector<16x32xbf16>
    %8 = vector.shape_cast %7 : vector<16x32xbf16> to vector<16x4x8xbf16>
    %9 = tpu.transpose %8, [1, 0, 2] : vector<16x4x8xbf16> -> vector<4x16x8xbf16>
    %c0_5 = arith.constant 0 : index
    %c0_6 = arith.constant 0 : index
    %c0_7 = arith.constant 0 : index
    %10 = vector.load %arg9[%c0_5, %c0_6, %c0_7] : memref<4x16x8xbf16, #tpu.memory_space<vmem>>, vector<4x16x8xbf16>
    "tpu.trace_start"() <{level = 10 : i32, message = "hqd,hkd->hqk"}> : () -> ()
    %cst_8 = arith.constant dense<0.000000e+00> : vector<4x16x16xf32>
    %11 = tpu.matmul %9, %10, %cst_8 {dimension_numbers = #tpu.dot_dimension_numbers<[2], [2], [1], [1], [0, 0, 0, 1, 1, 1], [0], [0]>} : vector<4x16x8xbf16>, vector<4x16x8xbf16>, vector<4x16x16xf32> -> vector<4x16x16xf32>
    "tpu.trace_stop"() : () -> ()
    %cst_9 = arith.constant dense<0xFF800000> : vector<4x16xf32>
    %12 = vector.multi_reduction <maximumf>, %11, %cst_9 [2] : vector<4x16x16xf32> to vector<4x16xf32>
    %13 = vector.shape_cast %12 : vector<4x16xf32> to vector<4x16x1xf32>
    %14 = vector.broadcast %13 : vector<4x16x1xf32> to vector<4x16x16xf32>
    %15 = arith.subf %11, %14 : vector<4x16x16xf32>
    %16 = math.exp %15 : vector<4x16x16xf32>
    %cst_10 = arith.constant dense<0.000000e+00> : vector<4x16xf32>
    %17 = vector.multi_reduction <add>, %16, %cst_10 [2] : vector<4x16x16xf32> to vector<4x16xf32>
    %18 = vector.shape_cast %17 : vector<4x16xf32> to vector<4x16x1xf32>
    %19 = tpu.reciprocal %18 {approx = true} : vector<4x16x1xf32> -> vector<4x16x1xf32>
    %20 = vector.broadcast %19 : vector<4x16x1xf32> to vector<4x16x16xf32>
    %21 = arith.mulf %16, %20 : vector<4x16x16xf32>
    %22 = arith.truncf %21 : vector<4x16x16xf32> to vector<4x16x16xbf16>
    %c0_11 = arith.constant 0 : index
    %c0_12 = arith.constant 0 : index
    %c0_13 = arith.constant 0 : index
    %23 = vector.load %arg10[%c0_11, %c0_12, %c0_13] : memref<4x16x8xbf16, #tpu.memory_space<vmem>>, vector<4x16x8xbf16>
    "tpu.trace_start"() <{level = 10 : i32, message = "hqk,hkd->hqd"}> : () -> ()
    %cst_14 = arith.constant dense<0.000000e+00> : vector<4x16x8xf32>
    %24 = tpu.matmul %22, %23, %cst_14 {dimension_numbers = #tpu.dot_dimension_numbers<[2], [1], [1], [2], [0, 0, 0, 1, 1, 2], [0], [0]>} : vector<4x16x16xbf16>, vector<4x16x8xbf16>, vector<4x16x8xf32> -> vector<4x16x8xf32>
    "tpu.trace_stop"() : () -> ()
    %25 = arith.truncf %24 : vector<4x16x8xf32> to vector<4x16x8xbf16>
    %26 = vector.extract_strided_slice %25 {offsets = [0, 0, 0], sizes = [1, 16, 8], strides = [1, 1, 1]} : vector<4x16x8xbf16> to vector<1x16x8xbf16>
    %27 = vector.shape_cast %26 : vector<1x16x8xbf16> to vector<16x8xbf16>
    %c0_15 = arith.constant 0 : index
    %c0_16 = arith.constant 0 : index
    %c0_17 = arith.constant 0 : index
    %28 = vector.load %arg7[%c0_15, %c0_16, %c0_17] : memref<4x8x32xbf16, #tpu.memory_space<vmem>>, vector<1x8x32xbf16>
    %29 = vector.shape_cast %28 : vector<1x8x32xbf16> to vector<8x32xbf16>
    %cst_18 = arith.constant dense<0.000000e+00> : vector<16x32xf32>
    %30 = tpu.matmul %27, %29, %cst_18 {dimension_numbers = #tpu.dot_dimension_numbers<[1], [0], [0], [1], [0, 0, 1, 1], [], []>} : vector<16x8xbf16>, vector<8x32xbf16>, vector<16x32xf32> -> vector<16x32xf32>
    %31 = vector.extract_strided_slice %25 {offsets = [1, 0, 0], sizes = [1, 16, 8], strides = [1, 1, 1]} : vector<4x16x8xbf16> to vector<1x16x8xbf16>
    %32 = vector.shape_cast %31 : vector<1x16x8xbf16> to vector<16x8xbf16>
    %c1 = arith.constant 1 : index
    %c0_19 = arith.constant 0 : index
    %c0_20 = arith.constant 0 : index
    %33 = vector.load %arg7[%c1, %c0_19, %c0_20] : memref<4x8x32xbf16, #tpu.memory_space<vmem>>, vector<1x8x32xbf16>
    %34 = vector.shape_cast %33 : vector<1x8x32xbf16> to vector<8x32xbf16>
    %cst_21 = arith.constant dense<0.000000e+00> : vector<16x32xf32>
    %35 = tpu.matmul %32, %34, %cst_21 {dimension_numbers = #tpu.dot_dimension_numbers<[1], [0], [0], [1], [0, 0, 1, 1], [], []>} : vector<16x8xbf16>, vector<8x32xbf16>, vector<16x32xf32> -> vector<16x32xf32>
    %36 = arith.addf %30, %35 : vector<16x32xf32>
    %37 = vector.extract_strided_slice %25 {offsets = [2, 0, 0], sizes = [1, 16, 8], strides = [1, 1, 1]} : vector<4x16x8xbf16> to vector<1x16x8xbf16>
    %38 = vector.shape_cast %37 : vector<1x16x8xbf16> to vector<16x8xbf16>
    %c2 = arith.constant 2 : index
    %c0_22 = arith.constant 0 : index
    %c0_23 = arith.constant 0 : index
    %39 = vector.load %arg7[%c2, %c0_22, %c0_23] : memref<4x8x32xbf16, #tpu.memory_space<vmem>>, vector<1x8x32xbf16>
    %40 = vector.shape_cast %39 : vector<1x8x32xbf16> to vector<8x32xbf16>
    %cst_24 = arith.constant dense<0.000000e+00> : vector<16x32xf32>
    %41 = tpu.matmul %38, %40, %cst_24 {dimension_numbers = #tpu.dot_dimension_numbers<[1], [0], [0], [1], [0, 0, 1, 1], [], []>} : vector<16x8xbf16>, vector<8x32xbf16>, vector<16x32xf32> -> vector<16x32xf32>
    %42 = arith.addf %36, %41 : vector<16x32xf32>
    %43 = vector.extract_strided_slice %25 {offsets = [3, 0, 0], sizes = [1, 16, 8], strides = [1, 1, 1]} : vector<4x16x8xbf16> to vector<1x16x8xbf16>
    %44 = vector.shape_cast %43 : vector<1x16x8xbf16> to vector<16x8xbf16>
    %c3 = arith.constant 3 : index
    %c0_25 = arith.constant 0 : index
    %c0_26 = arith.constant 0 : index
    %45 = vector.load %arg7[%c3, %c0_25, %c0_26] : memref<4x8x32xbf16, #tpu.memory_space<vmem>>, vector<1x8x32xbf16>
    %46 = vector.shape_cast %45 : vector<1x8x32xbf16> to vector<8x32xbf16>
    %cst_27 = arith.constant dense<0.000000e+00> : vector<16x32xf32>
    %47 = tpu.matmul %44, %46, %cst_27 {dimension_numbers = #tpu.dot_dimension_numbers<[1], [0], [0], [1], [0, 0, 1, 1], [], []>} : vector<16x8xbf16>, vector<8x32xbf16>, vector<16x32xf32> -> vector<16x32xf32>
    %48 = arith.addf %42, %47 : vector<16x32xf32>
    %c0_28 = arith.constant 0 : index
    %c0_29 = arith.constant 0 : index
    %c0_30 = arith.constant 0 : index
    %49 = vector.load %arg8[%c0_28, %c0_29, %c0_30] : memref<1x16x32xf32, #tpu.memory_space<vmem>>, vector<1x16x32xf32>
    %50 = vector.shape_cast %49 : vector<1x16x32xf32> to vector<16x32xf32>
    %51 = vector.shape_cast %48 : vector<16x32xf32> to vector<1x16x32xf32>
    tpu.vector_store %arg8[%c0_28, %c0_29, %c0_30], %51 {strides = array<i32>} : memref<1x16x32xf32, #tpu.memory_space<vmem>>, vector<1x16x32xf32>,
    return
  }
  func.func @transform_0(%arg0: i32, %arg1: i32) -> (i32, i32, i32) {
    %c0_i32 = arith.constant 0 : i32
    %c0_i32_0 = arith.constant 0 : i32
    return %arg0, %arg1, %c0_i32 : i32, i32, i32
  }
  func.func @transform_1(%arg0: i32, %arg1: i32) -> (i32, i32, i32) {
    %c0_i32 = arith.constant 0 : i32
    %c0_i32_0 = arith.constant 0 : i32
    %c0_i32_1 = arith.constant 0 : i32
    return %arg0, %c0_i32, %c0_i32_0 : i32, i32, i32
  }
  func.func @transform_2(%arg0: i32, %arg1: i32) -> (i32, i32) {
    %c0_i32 = arith.constant 0 : i32
    %c0_i32_0 = arith.constant 0 : i32
    %c0_i32_1 = arith.constant 0 : i32
    return %c0_i32, %c0_i32_0 : i32, i32
  }
  func.func @transform_3(%arg0: i32, %arg1: i32) -> (i32, i32) {
    %c0_i32 = arith.constant 0 : i32
    %c0_i32_0 = arith.constant 0 : i32
    %c0_i32_1 = arith.constant 0 : i32
    return %c0_i32, %c0_i32_0 : i32, i32
  }
  func.func @transform_4(%arg0: i32, %arg1: i32) -> (i32, i32) {
    %c0_i32 = arith.constant 0 : i32
    %c0_i32_0 = arith.constant 0 : i32
    %c0_i32_1 = arith.constant 0 : i32
    return %c0_i32, %c0_i32_0 : i32, i32
  }
  func.func @transform_5(%arg0: i32, %arg1: i32) -> (i32, i32, i32) {
    %c0_i32 = arith.constant 0 : i32
    %c0_i32_0 = arith.constant 0 : i32
    %c0_i32_1 = arith.constant 0 : i32
    %c0_i32_2 = arith.constant 0 : i32
    return %c0_i32, %c0_i32_0, %c0_i32_1 : i32, i32, i32
  }
  func.func @transform_6(%arg0: i32, %arg1: i32) -> (i32, i32, i32) {
    %c0_i32 = arith.constant 0 : i32
    %c0_i32_0 = arith.constant 0 : i32
    return %arg0, %arg1, %c0_i32 : i32, i32, i32
  }
}

</mosaic_0001>

<bundles_post_ra>
// kernel: tpu_custom_call.1
= control target key start
LH: loop header
LB: loop body
LE: loop exit
PB: predicated region body
PF: predicated region fallthrough
CT: control target
= control target key end

     0   :  { %s3487_s0 = inlined_call_operand.hbm [shape: bf16[2,16,32], index: 0, kind: input, shape index: {}]   ;;  %s3488_s1 = inlined_call_operand.hbm [shape: bf16[2,16,32], index: 1, kind: input, shape index: {}]   ;;  %s3489_s2 = inlined_call_operand.hbm [shape: bf16[32,32], index: 2, kind: input, shape index: {}]   ;;  %s3490_s3 = inlined_call_operand.hbm [shape: bf16[32,32], index: 3, kind: input, shape index: {}]   ;;  %s3491_s4 = inlined_call_operand.hbm [shape: bf16[32,32], index: 4, kind: input, shape index: {}]   ;;  %s3492_s5 = inlined_call_operand.vmem [shape: bf16[4,8,32], index: 5, kind: input, shape index: {}]   ;;  %s3493_s6 = inlined_call_operand.hbm [shape: f32[2,16,32], index: 6, kind: output, shape index: {}]  }
   0x1   :  { %3503 = sst [smem:[#allocation21_spill]] %s3487_s0 }
   0x2   :  { %3504 = sst [smem:[#allocation22_spill]] %s3489_s2 }
   0x3   :  { %3505 = sst [smem:[#allocation23_spill]] %s3490_s3 }
   0x4   :  { %11 = vsyncpa [#allocation5], 0 }
   0x5   :  { %13 = vsyncpa [#allocation5 + $0x1], 0 }
   0x6   :  { %14 = vsyncpa [#allocation8], 0 }
   0x7   :  { %16 = vsyncpa [#allocation8 + $0x1], 0 }
   0x8   :  { %17 = vsyncpa [#allocation11], 0 }
   0x9   :  { %18 = vsyncpa [#allocation6], 0 }
   0xa   :  { %20 = vsyncpa [#allocation6 + $0x1], 0  ;;  %s2880_s21 = smov 0   ;;  %s2882_s22 = smov 0  }
   0xb   :  { %s2884_s23 = smov 0   ;;  %s2886_s24 = smov 0  }
   0xc   :  { %s2888_s25 = smov 0   ;;  %s2890_s26 = smov 0  }
   0xd LB: > { %3506 = sst [smem:[#allocation19_spill]] %s2805_s21  ;;  %s2911_s27 = sadd.s32 4294967295, %s2825_s26   ;;  %s2825_s26 = sphi %s2890_s26, %s26_s26   ;;  %s2821_s25 = sphi %s2888_s25, %s3535_s25   ;;  %s2817_s24 = sphi %s2886_s24, %s3534_s24   ;;  %s2813_s23 = sphi %s2884_s23, %s3533_s23   ;;  %s2809_s22 = sphi %s2882_s22, %s3532_s22   ;;  %s2805_s21 = sphi %s2880_s21, %s3531_s21  }
   0xe   : > { %s2231_s28 = sadd.s32 4294967294, %s2825_s26   ;;  %p60_p0 = scmp.ne.s32.totalorder %s2809_s22, %s2805_s21 }
   0xf   : > { %p3494_p1 = scmp.eq.s32.totalorder %s2911_s27, 0  ;;  %p202_p3 = scmp.eq.s32.totalorder %s2231_s28, 1 }
  0x10   : > { %p2232_p5 = scmp.ge.s32.totalorder %s2825_s26, 1  ;;  %p209_p7 = scmp.lt.s32.totalorder %s2825_s26, 3 }
  0x11   : > { %p2920_p4 = por %p3494_p1, %p60_p0  ;;  %p2925_p6 = por %p202_p3, %p60_p0 }
  0x12   : > { %p2930_p8 = pnand %p2232_p5, %p209_p7  ;;  %s2827_s8 = smov [#allocation9]  }
  0x13   : > { %s3507_s29 = scalar_select %p2920_p4, 1, 0 }
  0x14   : > { %s3508_s30 = scalar_select %p2925_p6, 1, 0 }
  0x15   : > { %s3510_s7 = scalar_select %p2930_p8, 1, 0 }
  0x16   : > { %3509 = sst [smem:[#allocation20_spill]] %s3508_s30  ;;  %s221_s9 = sshll.u32 %s2827_s8, 4  ;;  %s2934_s9 = int_to_ptr.vmem [resolvable:$true] %s221_s9 }
  0x17   : > { %p2455_p9 = pneg %p2930_p8  ;;  %s2828_s11 = smov [#allocation10]  }
  0x18   : > { %s234_s12 = sshll.u32 %s2828_s11, 4  ;;  %s2829_s13 = smov [#allocation12]   ;;  %s2945_s12 = int_to_ptr.vmem [resolvable:$true] %s234_s12 }
  0x19   : > { %p2941_p11 = pnand %p2455_p9, %p3494_p1  ;;  %s2947_s14 = sshll.u32 %s2829_s13, 4  ;;  %s248_s14 = int_to_ptr.vmem [resolvable:$true] %s2947_s14 }
  0x1a   : > { %s3512_s2 = sld [smem:[#allocation22_spill]] }
  0x1b   : > { %p2957_p13 = pneg %p2941_p11 }
  0x20   : > { %s2587_s17 = scalar_lea.hbm %s3512_s2, 256 }
  0x21   : > { %p2588_p12 = scmp.ne.s32.totalorder %s3512_s2, %s2587_s17  ;;  %p2594_p5 = scmp.lt.u32.totalorder %s2587_s17, %s3512_s2 }
  0x23   : > { %p2590_p0 = pnand %p2957_p13, %p2588_p12 }
  0x25   : > { %p2591_p3 = pneg %p2590_p0 }
  0x27   : > { %p2596_p7 = pnand %p2594_p5, %p2591_p3 }
  0x29   : > { %2599 = shalt.err (!%p2596_p7)
}
  0x2a   : > { %s2600_s11 = scalar_lea.vmem %s2934_s9, 256  ;;  %p2608_p2 = scmp.lt.s32.totalorder %s2934_s9, %s2934_s9 }
  0x2b   : > { %p2601_p9 = scmp.ne.s32.totalorder %s2934_s9, %s2600_s11  ;;  %p2609_p6 = scmp.lt.s32.totalorder %s2600_s11, %s2600_s11 }
  0x2d   : > { %p2603_p10 = pnand %p2601_p9, %p2957_p13  ;;  %p2610_p12 = por %p2609_p6, %p2608_p2 }
  0x2f   : > { %p2604_p1 = pneg %p2603_p10 }
  0x31   : > { %p2611_p0 = pnand %p2610_p12, %p2604_p1 }
  0x33   : > { %2614 = shalt.err (!%p2611_p0)
}
  0x34   : > { %s3499_s13 = smov 64   ;;  %s3501_s15 = smov 4  }
  0x35   : > { %2458 = dma.hbm_to_vmem [thread:$0]  (!%p2941_p11), %s3512_s2, 256, %s2934_s9, [#allocation8], %s3499_s13, %s3499_s13, %s3501_s15  }
  0x36   : > { %s3514_s3 = sld [smem:[#allocation23_spill]] }
  0x3c   : > { %s2615_s28 = scalar_lea.hbm %s3514_s3, 256 }
  0x3d   : > { %p2616_p1 = scmp.ne.s32.totalorder %s3514_s3, %s2615_s28  ;;  %p2622_p10 = scmp.lt.u32.totalorder %s2615_s28, %s3514_s3 }
  0x3f   : > { %p2618_p2 = pnand %p2616_p1, %p2957_p13 }
  0x41   : > { %p2619_p6 = pneg %p2618_p2 }
  0x43   : > { %p2624_p3 = pnand %p2622_p10, %p2619_p6 }
  0x45   : > { %2627 = shalt.err (!%p2624_p3)
}
  0x46   : > { %s2628_s9 = scalar_lea.vmem %s2945_s12, 256  ;;  %p2636_p12 = scmp.lt.s32.totalorder %s2945_s12, %s2945_s12 }
  0x47   : > { %p2629_p5 = scmp.ne.s32.totalorder %s2945_s12, %s2628_s9  ;;  %p2637_p0 = scmp.lt.s32.totalorder %s2628_s9, %s2628_s9 }
  0x49   : > { %p2631_p7 = pnand %p2629_p5, %p2957_p13  ;;  %p2638_p1 = por %p2637_p0, %p2636_p12 }
  0x4b   : > { %p2632_p9 = pneg %p2631_p7 }
  0x4d   : > { %p2639_p2 = pnand %p2638_p1, %p2632_p9 }
  0x4f   : > { %2642 = shalt.err (!%p2639_p2)
}
  0x50   : > { %2461 = dma.hbm_to_vmem [thread:$0]  (!%p2941_p11), %s3514_s3, 256, %s2945_s12, [#allocation11], %s3499_s13, %s3499_s13, %s3501_s15  }
  0x51   : > { %s2643_s18 = scalar_lea.hbm %s3491_s4, 256 }
  0x52   : > { %p2644_p6 = scmp.ne.s32.totalorder %s3491_s4, %s2643_s18  ;;  %p2650_p5 = scmp.lt.u32.totalorder %s2643_s18, %s3491_s4 }
  0x54   : > { %p2646_p10 = pnand %p2644_p6, %p2957_p13 }
  0x56   : > { %p2647_p3 = pneg %p2646_p10 }
  0x58   : > { %p2652_p7 = pnand %p2650_p5, %p2647_p3 }
  0x5a   : > { %2655 = shalt.err (!%p2652_p7)
}
  0x5b   : > { %s2656_s9 = scalar_lea.vmem %s248_s14, 256  ;;  %p2664_p1 = scmp.lt.s32.totalorder %s248_s14, %s248_s14 }
  0x5c   : > { %p2657_p9 = scmp.ne.s32.totalorder %s248_s14, %s2656_s9  ;;  %p2665_p2 = scmp.lt.s32.totalorder %s2656_s9, %s2656_s9 }
  0x5e   : > { %p2659_p12 = pnand %p2657_p9, %p2957_p13  ;;  %p2666_p4 = por %p2665_p2, %p2664_p1 }
  0x60   : > { %p2660_p0 = pneg %p2659_p12 }
  0x62   : > { %p2667_p8 = pnand %p2666_p4, %p2660_p0 }
  0x64   : > { %2670 = shalt.err (!%p2667_p8)
}
  0x65   : > { %2464 = dma.hbm_to_vmem [thread:$0]  (!%p2941_p11), %s3491_s4, 256, %s248_s14, [#allocation11], %s3499_s13, %s3499_s13, %s3501_s15  }
  0x66   : > { %s47_s20 = sadd.s32 1, %s2813_s23  ;;  %s38_s10 = sadd.s32 1, %s2821_s25 }
  0x67   : > { %p54_p4 = scmp.ne.s32.totalorder %s2813_s23, %s2809_s22  ;;  %p40_p8 = scmp.ge.s32.totalorder %s38_s10, 2 }
  0x68   : > { %p55_p13 = scmp.eq.s32.totalorder %s2825_s26, 0  ;;  %p3515_p6 = scmp.eq.s32.totalorder %s2911_s27, 1 }
  0x69   : > { %p2479_p3 = scmp.lt.s32.totalorder %s2825_s26, 2  ;;  %s3537_s10 = smov (%p40_p8, %s38_s10), 0 }
  0x6a   : > { %p3036_p10 = por %p3515_p6, %p54_p4  ;;  %p56_p5 = por %p55_p13, %p54_p4 }
  0x6b   : > { %s264_s16 = sand.u32 1, %s2813_s23   ;;  %s42_s17 = ssub.s32 %s2821_s25, %s3537_s10 }
  0x6c   : > { %p45_p7 = scmp.eq.s32.totalorder %s42_s17, 0  ;;  %s2237_s14 = sshll.u32 %s264_s16, 3 }
  0x6d   : > { %s2293_s18 = sshll.u32 %s2821_s25, 7  ;;  %s3517_s0 = sld [smem:[#allocation21_spill]] }
  0x6e   : > { %s3048_s19 = scalar_select %p45_p7, %s2813_s23, %s47_s20  }
  0x6f   : > { %s268_s9 = scalar_lea.vmem [#allocation4], %s2237_s14  ;;  %p3059_p11 = pnand %p2479_p3, %p56_p5 }
  0x70   : > { %s277_s12 = sshll.u32 %s268_s9, 4  ;;  %s3066_s28 = scalar_lea.hbm %s3488_s1, %s2293_s18  ;;  %s3055_s12 = int_to_ptr.vmem [resolvable:$true] %s277_s12 }
  0x71   : > { %s291_s8 = scalar_lea.vmem [#allocation7], %s2237_s14  ;;  %s3070_s15 = scalar_lea.sflag [#allocation5], %s264_s16 }
  0x72   : > { %s3068_s13 = sshll.u32 %s291_s8, 4  ;;  %p2673_p12 = pneg %p3059_p11  ;;  %s3102_s13 = int_to_ptr.vmem [resolvable:$true] %s3068_s13 }
  0x73   : > { %s3053_s11 = scalar_lea.hbm %s3517_s0, %s2293_s18  ;;  %s2676_s20 = scalar_lea.hbm %s3517_s0, 256 }
  0x74   : > { %s2671_s9 = scalar_lea.hbm %s3053_s11, 128  ;;  %p2677_p2 = scmp.lt.u32.totalorder %s3053_s11, %s3517_s0 }
  0x75   : > { %p2672_p9 = scmp.ne.s32.totalorder %s3053_s11, %s2671_s9  ;;  %p2678_p4 = scmp.lt.u32.totalorder %s2676_s20, %s2671_s9 }
  0x76   : > { %p2680_p13 = scmp.lt.u32.totalorder %s2671_s9, %s3053_s11 }
  0x77   : > { %p2674_p0 = pnand %p2673_p12, %p2672_p9  ;;  %p2679_p8 = por %p2678_p4, %p2677_p2 }
  0x79   : > { %p2675_p1 = pneg %p2674_p0  ;;  %p2681_p6 = por %p2680_p13, %p2679_p8 }
  0x7b   : > { %p2682_p3 = pnand %p2681_p6, %p2675_p1 }
  0x7d   : > { %2685 = shalt.err (!%p2682_p3)
}
  0x7e   : > { %s2686_s16 = scalar_lea.vmem %s3055_s12, 128  ;;  %s2832_s2 = smov [#allocation4]  }
  0x7f   : > { %p2687_p5 = scmp.ne.s32.totalorder %s3055_s12, %s2686_s16  ;;  %s2691_s3 = sshll.u32 %s2832_s2, 4  ;;  %s2692_s3 = int_to_ptr.vmem [resolvable:$false] %s2691_s3 }
  0x80   : > { %s2693_s14 = scalar_lea.vmem %s2692_s3, 256  ;;  %p2694_p0 = scmp.lt.s32.totalorder %s3055_s12, %s2692_s3 }
  0x81   : > { %p2689_p7 = pnand %p2687_p5, %p2673_p12  ;;  %p2695_p2 = scmp.lt.s32.totalorder %s2693_s14, %s2686_s16 }
  0x83   : > { %p2690_p9 = pneg %p2689_p7  ;;  %p2696_p4 = por %p2695_p2, %p2694_p0 }
  0x85   : > { %p2697_p8 = pnand %p2696_p4, %p2690_p9 }
  0x87   : > { %2700 = shalt.err (!%p2697_p8)
}
  0x88   : > { %s3519_s8 = smov 4   ;;  %s3520_s9 = smov 64  }
  0x89   : > { %2468 = dma.hbm_to_vmem [thread:$0]  (!%p3059_p11), %s3053_s11, 128, %s3055_s12, %s3070_s15, %s3520_s9, %s3520_s9, %s3519_s8  }
  0x8a   : > { %s287_s20 = sand.u32 1, %s2825_s26   ;;  %s2701_s18 = scalar_lea.hbm %s3066_s28, 128 }
  0x8b   : > { %s3105_s17 = scalar_lea.sflag [#allocation8], %s287_s20  ;;  %p2702_p1 = scmp.ne.s32.totalorder %s3066_s28, %s2701_s18 }
  0x8c   : > { %s2706_s3 = scalar_lea.hbm %s3488_s1, 256  ;;  %p2707_p3 = scmp.lt.u32.totalorder %s3066_s28, %s3488_s1 }
  0x8d   : > { %p2704_p13 = pnand %p2702_p1, %p2673_p12  ;;  %p2708_p5 = scmp.lt.u32.totalorder %s2706_s3, %s2701_s18 }
  0x8e   : > { %p2710_p9 = scmp.lt.u32.totalorder %s2701_s18, %s3066_s28 }
  0x8f   : > { %p2705_p6 = pneg %p2704_p13  ;;  %p2709_p7 = por %p2708_p5, %p2707_p3 }
  0x91   : > { %p2711_p0 = por %p2710_p9, %p2709_p7 }
  0x93   : > { %p2712_p2 = pnand %p2711_p0, %p2705_p6 }
  0x95   : > { %2715 = shalt.err (!%p2712_p2)
}
  0x96   : > { %s2716_s15 = scalar_lea.vmem %s3102_s13, 128  ;;  %s2833_s11 = smov [#allocation7]  }
  0x97   : > { %p2717_p4 = scmp.ne.s32.totalorder %s3102_s13, %s2716_s15  ;;  %s2721_s12 = sshll.u32 %s2833_s11, 4  ;;  %s2722_s12 = int_to_ptr.vmem [resolvable:$false] %s2721_s12 }
  0x98   : > { %s2723_s0 = scalar_lea.vmem %s2722_s12, 256  ;;  %p2724_p13 = scmp.lt.s32.totalorder %s3102_s13, %s2722_s12 }
  0x99   : > { %p2719_p8 = pnand %p2717_p4, %p2673_p12  ;;  %p2725_p3 = scmp.lt.s32.totalorder %s2723_s0, %s2716_s15 }
  0x9b   : > { %p2720_p1 = pneg %p2719_p8  ;;  %p2726_p5 = por %p2725_p3, %p2724_p13 }
  0x9d   : > { %p2727_p7 = pnand %p2726_p5, %p2720_p1 }
  0x9f   : > { %2730 = shalt.err (!%p2727_p7)
}
  0xa0   : > { %2471 = dma.hbm_to_vmem [thread:$0]  (!%p3059_p11), %s3066_s28, 128, %s3102_s13, %s3105_s17, %s3520_s9, %s3520_s9, %s3519_s8  }
  0xa1   : > { %p3521_p12 = scmp.ne.s32.totalorder %s3510_s7, 0 }
  0xa2   : > { %s3137_s20 = sand.u32 (!%p3521_p12), 1, %s2809_s22   ;;  %p3522_p6 = scmp.ne.s32.totalorder (!%p3521_p12), %s3507_s29, 0 }
  0xa3   : > { %310 = sbr.rel (%p3521_p12) target bundleno = 1604 (0x644), region = 44  ;;  %s2244_s18 = sshll.u32 (!%p3521_p12), %s3137_s20, 3 }
  0xa4   : > { %s313_s16 = scalar_lea.sflag (!%p3521_p12), [#allocation5], %s3137_s20  ;;  %s3141_s2 = scalar_lea.vmem (!%p3521_p12), [#allocation4], %s2244_s18 }
  0xaa   : > { %2784 = dma.done.wait (%p3522_p6), %s313_s16, 128  }
  0xab   : > { %2786 = vsyncadd (%p3522_p6), %s313_s16, 4294967168  ;;  %s321_s13 = sand.u32 1, %s2911_s27   ;;  %s325_s21 = scalar_lea.vmem [#allocation7], %s2244_s18 }
  0xac   : > { %s322_s7 = scalar_lea.sflag [#allocation8], %s321_s13 }
  0xad   : > { %2788 = dma.done.wait (%p3522_p6), %s322_s7, 128  }
  0xae   : > { %2790 = vsyncadd (%p3522_p6), %s322_s7, 4294967168  ;;  %p3523_p11 = scmp.eq.s32.totalorder %s2911_s27, 0 }
  0xb0   : > { %2792 = dma.done.wait (%p3523_p11), [#allocation8], 256   ;;  %p3524_p9 = pmov %p3523_p11 }
  0xb2   : > { %2794 = vsyncadd (%p3524_p9), [#allocation8], 4294967040  ;;  %p3525_p0 = pmov %p3524_p9 }
  0xb4   : > { %2796 = dma.done.wait (%p3525_p0), [#allocation11], 512   ;;  %p3526_p2 = pmov %p3525_p0 }
  0xb5   : > { %v2834_v0 = vmov 0.0   ;;  %vm2835_vm0 = vmmov 0   ;;  %v2547_v1 = vld [vmem:[#allocation10] sm:$0xff]   ;;  %v2548_v2 = vld [vmem:[#allocation10 + $0x8] sm:$0xff]   ;;  %vm401_vm1 = vcmask 261120   ;;  %v2550_v4 = vld [vmem:[#allocation12] sm:$0xff]   ;;  %v538_v26 = vlaneseq }
  0xb6   : > { %2798 = vsyncadd (%p3526_p2), [#allocation11], 4294966784  ;;  %2329 = vmatprep.subr.bf16.mxu0 %v2834_v0  ;;  %2333 = vmatprep.mubr.msk.bf16.mxu0 %vm2835_vm0, %v2834_v0  ;;  %v2549_v3 = vld [vmem:[%s325_s21] sm:$0xff]   ;;  %v2551_v5 = vld [vmem:[#allocation12 + $0x8] sm:$0xff]   ;;  %s2836_s27 = smov 104   ;;  %s2837_s29 = smov 120  }
  0xb7   : > { %2353 = vmatprep.subr.bf16.mxu1 %v2834_v0  ;;  %2355 = vmatprep.mubr.msk.bf16.mxu1 %vm2835_vm0, %v2834_v0  ;;  %v2552_v6 = vld [vmem:[#allocation9] sm:$0xff]   ;;  %v2553_v7 = vld [vmem:[#allocation9 + $0x8] sm:$0xff]   ;;  %s2838_s28 = smov 112   ;;  %v2839_v24 = vmov 1983009808   ;;  %v539_v28 = vshrl.u32 %v538_v26, 7 }
  0xb8   : > { %2330 = vmatpush3.bf16.msra.mxu0 %v2547_v1  ;;  %v2554_v8 = vld [vmem:[%s3141_s2] sm:$0xff]   ;;  %v536_v25 = vunpack.c.l.s4 %v2839_v24  ;;  %v2840_v29 = vmov 1934713408   ;;  %v2841_v32 = vmov 0   ;;  %vm782_vm2 = vcmask 64512   ;;  %s2249_s0 = sshll.u32 %s3137_s20, 4 }
  0xb9   : > { %2331 = vmatprep.subr.bf16.mxu0 %v2834_v0  ;;  %v567_v30 = vunpack.c.l.s4 %v2840_v29  ;;  %v3195_v33 = vpack.i.b16 %v2841_v32, %v2841_v32  ;;  %vm1597_vm3 = vcmask 130048   ;;  %vm1880_vm4 = vcmask 1043456   ;;  %s370_s18 = scalar_lea.vmem [#allocation13], %s2249_s0  ;;  %s2295_s2 = sshll.u32 %s2817_s24, 8 }
  0xba   : > { %v537_v27 = vunpack.c.0.s8 %v536_v25  ;;  %s2092_s16 = sshll.u32 %s370_s18, 4  ;;  %s3436_s21 = scalar_lea.hbm %s3493_s6, %s2295_s2  ;;  %s3431_s16 = int_to_ptr.vmem [resolvable:$true] %s2092_s16 }
  0xbb   : > { %v568_v39 = vunpack.c.0.s8 %v567_v30  ;;  %s2731_s24 = scalar_lea.vmem %s3431_s16, 256 }
  0xbc   : > { %2332 = vmatpush3.bf16.msra.mxu0 %v2548_v2  ;;  %v3197_v38 = vsub.s32 %v537_v27, %v539_v28  ;;  %p2732_p4 = scmp.ne.s32.totalorder %s3431_s16, %s2731_s24 }
  0xbd   : > { %2337 = vmatprep.subr.bf16.mxu0 %v2834_v0  ;;  %v3201_v47 = vsub.s32 %v568_v39, %v539_v28 }
  0xbe   : > { %p2733_p8 = pnand %p2732_p4, %p3036_p10 }
  0xbf   : > { %2334 = vmatmul.mubr.msk.bf16.vlgmr.msra.gmra.mrb[0].mxu0 %vm401_vm1, %v2549_v3 }
  0xc0   : > { %2338 = vmatpush3.bf16.msra.mxu0 %v2550_v4  ;;  %2341 = vmatprep.mubr.msk.bf16.mxu0 %vm2835_vm0, %v2834_v0  ;;  %p2734_p1 = pneg %p2733_p8 }
  0xc1   : > { %2339 = vmatprep.subr.bf16.mxu0 %v2834_v0 }
  0xc4   : > { %2340 = vmatpush3.bf16.msra.mxu0 %v2551_v5 }
  0xc5   : > { %2345 = vmatprep.subr.bf16.mxu0 %v2834_v0 }
  0xc7   : > { %2342 = vmatmul.mubr.msk.bf16.vlgmr.msra.gmra.mrb[4].mxu0 %vm401_vm1, %v2549_v3 }
  0xc8   : > { %2346 = vmatpush3.bf16.msra.mxu0 %v2552_v6  ;;  %2349 = vmatprep.mubr.msk.bf16.mxu0 %vm2835_vm0, %v2834_v0 }
  0xc9   : > { %2347 = vmatprep.subr.bf16.mxu0 %v2834_v0 }
  0xcc   : > { %2348 = vmatpush3.bf16.msra.mxu0 %v2553_v7 }
  0xcd   : > { %2359 = vmatprep.subr.bf16.mxu0 %v2834_v0 }
  0xcf   : > { %2350 = vmatmul.mubr.msk.bf16.vlgmr.msra.gmra.mrb[8].mxu0 %vm401_vm1, %v2554_v8 }
  0xd0   : > { %2361 = vmatprep.mubr.msk.bf16.mxu0 %vm2835_vm0, %v2834_v0 }
 0x192   : > { %v439_v9 = vpop.f32.mrb[0].mxu0 }
 0x193   : > { %v2335_v10 = vpop.f32.mrb[1].mxu0 }
 0x194   : > { %v442_v11 = vpop.f32.mrb[2].mxu0 }
 0x195   : > { %v446_v12 = vpack.c.bf16 %v442_v11, %v439_v9  ;;  %v2336_v13 = vpop.f32.mrb[3].mxu0 }
 0x197   : > { %510 = vrot.lane.b32.xlu1 %v446_v12, %s2836_s27  ;;  %506 = vrot.lane.b32.xlu0 %v446_v12, %s2837_s29  ;;  %v516_v36 = vshrl.u32 %v446_v12, 16 }
 0x19a   : > { %v497_v14 = vpop.f32.mrb[4].mxu0 }
 0x19b   : > { %508 = vrot.lane.b32.xlu0 %v446_v12, %s2838_s28  ;;  %v2343_v15 = vpop.f32.mrb[5].mxu0 }
 0x19c   : > { %v500_v16 = vpop.f32.mrb[6].mxu0 }
 0x19d   : > { %v3185_v17 = vpack.c.bf16 %v500_v16, %v497_v14  ;;  %v2344_v18 = vpop.f32.mrb[7].mxu0 }
 0x1a2   : > { %v1123_v19 = vpop.f32.mrb[8].mxu0 }
 0x1a3   : > { %v2351_v20 = vpop.f32.mrb[9].mxu0 }
 0x1a4   : > { %v1126_v21 = vpop.f32.mrb[10].mxu0 }
 0x1a5   : > { %v3187_v22 = vpack.c.bf16 %v1126_v21, %v1123_v19  ;;  %v2352_v23 = vpop.f32.mrb[11].mxu0 }
 0x1a7   : > { %1134 = vrot.lane.b32.xlu0 %v3187_v22, %s2838_s28  ;;  %1132 = vrot.lane.b32.xlu1 %v3187_v22, %s2837_s29 }
 0x1ab   : > { %1136 = vrot.lane.b32.xlu1 %v3187_v22, %s2836_s27 }
 0x209   : > { %v507_v31 = vpop.permute.xlu0 %506  ;;  %v511_v37 = vpop.permute.xlu1 %510 }
 0x20a   : > { %v514_v34 = vpack.i.b16 %v507_v31, %v446_v12  ;;  %v517_v35 = vshrl.u32 %v507_v31, 16  ;;  %v525_v44 = vshrl.u32 %v511_v37, 16 }
 0x20c   : > { %v518_v40 = vpack.i.b16 %v517_v35, %v516_v36  ;;  %v534_v42 = vcombine.high %v514_v34, %v3195_v33  ;;  %v541_v46 = vrot.slane %v514_v34, %v3197_v38  ;;  %v1142_v34 = vshrl.u32 %v3187_v22, 16 }
 0x20d   : > { %v509_v41 = vpop.permute.xlu0 %508 }
 0x20e   : > { %v522_v43 = vpack.i.b16 %v511_v37, %v509_v41  ;;  %v524_v45 = vshrl.u32 %v509_v41, 16  ;;  %v600_v50 = vcombine.high %v518_v40, %v3195_v33  ;;  %v548_v52 = vrot.slane %v534_v42, %v3197_v38 }
 0x20f   : > { %v607_v56 = vrot.slane %v518_v40, %v3197_v38 }
 0x210   : > { %v549_v48 = vcombine.high %v522_v43, %v3195_v33  ;;  %v556_v49 = vrot.slane %v522_v43, %v3197_v38  ;;  %v526_v51 = vpack.i.b16 %v525_v44, %v524_v45  ;;  %v614_v63 = vrot.slane %v600_v50, %v3197_v38 }
 0x212   : > { %v563_v53 = vrot.slane %v549_v48, %v3197_v38  ;;  %v564_v54 = vcombine.low %v541_v46, %v556_v49  ;;  %v565_v55 = vcombine.high %v541_v46, %v556_v49  ;;  %v615_v57 = vcombine.high %v526_v51, %v3195_v33 }
 0x213   : > { %v622_v58 = vrot.slane %v526_v51, %v3197_v38 }
 0x214   : > { %v572_v59 = vrot.slane %v564_v54, %v3201_v47  ;;  %v579_v60 = vrot.slane %v565_v55, %v3201_v47  ;;  %v580_v61 = vcombine.low %v548_v52, %v563_v53  ;;  %v581_v62 = vcombine.high %v548_v52, %v563_v53 }
 0x215   : > { %v629_v1 = vrot.slane %v615_v57, %v3197_v38  ;;  %v630_v2 = vcombine.low %v607_v56, %v622_v58  ;;  %v631_v3 = vcombine.high %v607_v56, %v622_v58 }
 0x216   : > { %v588_v4 = vrot.slane %v580_v61, %v3201_v47  ;;  %v595_v5 = vrot.slane %v581_v62, %v3201_v47  ;;  %v666_v6 = vcombine.low %v572_v59, %v579_v60  ;;  %v2257_v7 = vcombine.high %v572_v59, %v579_v60 }
 0x217   : > { %v638_v8 = vrot.slane %v630_v2, %v3201_v47  ;;  %v645_v9 = vrot.slane %v631_v3, %v3201_v47  ;;  %v646_v10 = vcombine.low %v614_v63, %v629_v1  ;;  %v647_v11 = vcombine.high %v614_v63, %v629_v1 }
 0x218   : > { %v673_v12 = vrot.slane %v666_v6, %v3197_v38  ;;  %v681_v13 = vrot.slane %v2257_v7, %v3197_v38  ;;  %v682_v14 = vcombine.low %v588_v4, %v595_v5  ;;  %v2258_v15 = vcombine.high %v588_v4, %v595_v5 }
 0x219   : > { %v654_v16 = vrot.slane %v646_v10, %v3201_v47  ;;  %v661_v18 = vrot.slane %v647_v11, %v3201_v47  ;;  %v716_v19 = vcombine.low %v638_v8, %v645_v9  ;;  %v2259_v20 = vcombine.high %v638_v8, %v645_v9  ;;  %v1133_v21 = vpop.permute.xlu1 %1132  ;;  %v1135_v26 = vpop.permute.xlu0 %1134 }
 0x21a   : > { %v689_v23 = vrot.slane %v682_v14, %v3197_v38  ;;  %v697_v24 = vrot.slane %v2258_v15, %v3197_v38  ;;  %v698_v25 = vcombine.low %v673_v12, %v681_v13  ;;  %v1140_v32 = vpack.i.b16 %v1133_v21, %v3187_v22 }
 0x21b   : > { %v723_v27 = vrot.slane %v716_v19, %v3197_v38  ;;  %v731_v28 = vrot.slane %v2259_v20, %v3197_v38  ;;  %v732_v29 = vcombine.low %v654_v16, %v661_v18  ;;  %v2260_v30 = vcombine.high %v654_v16, %v661_v18 }
 0x21c   : > { %v706_v31 = vcombine.low %v689_v23, %v697_v24  ;;  %v1143_v35 = vshrl.u32 %v1133_v21, 16  ;;  %v1150_v40 = vshrl.u32 %v1135_v26, 16  ;;  %v705_v42 = vrot.slane %v698_v25, %v3201_v47 }
 0x21d   : > { %v739_v36 = vrot.slane %v732_v29, %v3197_v38  ;;  %v747_v37 = vrot.slane %v2260_v30, %v3197_v38  ;;  %v748_v39 = vcombine.low %v723_v27, %v731_v28  ;;  %v1137_v41 = vpop.permute.xlu1 %1136  ;;  %v1160_v45 = vcombine.high %v1140_v32, %v3195_v33 }
 0x21e   : > { %v713_v43 = vrot.slane %v706_v31, %v3201_v47  ;;  %v1144_v44 = vpack.i.b16 %v1143_v35, %v1142_v34  ;;  %v1167_v48 = vrot.slane %v1140_v32, %v3197_v38  ;;  %v1148_v49 = vpack.i.b16 %v1137_v41, %v1135_v26 }
 0x21f   : > { %v756_v46 = vcombine.low %v739_v36, %v747_v37  ;;  %v1151_v22 = vshrl.u32 %v1137_v41, 16  ;;  %v755_v52 = vrot.slane %v748_v39, %v3201_v47  ;;  %v1174_v55 = vrot.slane %v1160_v45, %v3197_v38 }
 0x220   : > { %v714_v50 = vcombine.low %v705_v42, %v713_v43  ;;  %v715_v51 = vcombine.high %v705_v42, %v713_v43  ;;  %v1226_v53 = vcombine.high %v1144_v44, %v3195_v33  ;;  %v1175_v57 = vcombine.high %v1148_v49, %v3195_v33 }
 0x221   : > { %v763_v54 = vrot.slane %v756_v46, %v3201_v47  ;;  %v1152_v56 = vpack.i.b16 %v1151_v22, %v1150_v40  ;;  %v1233_v60 = vrot.slane %v1144_v44, %v3197_v38  ;;  %v1182_v61 = vrot.slane %v1148_v49, %v3197_v38 }
 0x222   : > { %v770_v58 = vshrl.u32 %v714_v50, 16  ;;  %v778_v59 = vshrl.u32 %v715_v51, 16  ;;  %v1189_v1 = vrot.slane %v1175_v57, %v3197_v38  ;;  %v1240_v3 = vrot.slane %v1226_v53, %v3197_v38 }
 0x223   : > { %v764_v62 = vcombine.low %v755_v52, %v763_v54  ;;  %v765_v63 = vcombine.high %v755_v52, %v763_v54  ;;  %v1241_v2 = vcombine.high %v1152_v56, %v3195_v33  ;;  %v1190_v4 = vcombine.low %v1167_v48, %v1182_v61 }
 0x224   : > { %v1191_v5 = vcombine.high %v1167_v48, %v1182_v61  ;;  %v1248_v6 = vrot.slane %v1152_v56, %v3197_v38  ;;  %v1206_v13 = vcombine.low %v1174_v55, %v1189_v1  ;;  %v1207_v14 = vcombine.high %v1174_v55, %v1189_v1 }
 0x225   : > { %v768_v7 = vpack.i.b16 %v764_v62, %v714_v50  ;;  %v771_v8 = vshrl.u32 %v764_v62, 16  ;;  %v776_v9 = vpack.i.b16 %v765_v63, %v715_v51  ;;  %v779_v10 = vshrl.u32 %v765_v63, 16 }
 0x226   : > { %v1198_v11 = vrot.slane %v1190_v4, %v3201_v47  ;;  %v1205_v12 = vrot.slane %v1191_v5, %v3201_v47  ;;  %v1255_v18 = vrot.slane %v1241_v2, %v3197_v38  ;;  %v1256_v19 = vcombine.low %v1233_v60, %v1248_v6 }
 0x227   : > { %v772_v15 = vpack.i.b16 %v771_v8, %v770_v58  ;;  %v780_v16 = vpack.i.b16 %v779_v10, %v778_v59  ;;  %783 = vst.msk [vmem:[#allocation2] sm:$0xff] %vm782_vm2, %v768_v7  ;;  %785 = vst.msk [vmem:[#allocation2 + $0x10] sm:$0xff] %vm782_vm2, %v776_v9  ;;  %v1214_v20 = vrot.slane %v1206_v13, %v3201_v47 }
 0x228   : > { %v1221_v21 = vrot.slane %v1207_v14, %v3201_v47  ;;  %v1257_v23 = vcombine.high %v1233_v60, %v1248_v6  ;;  %v1292_v24 = vcombine.low %v1198_v11, %v1205_v12  ;;  %v1264_v25 = vrot.slane %v1256_v19, %v3201_v47 }
 0x229   : > { %784 = vst.msk [vmem:[#allocation2 + $0x8] sm:$0xff] %vm782_vm2, %v772_v15  ;;  %786 = vst.msk [vmem:[#allocation2 + $0x18] sm:$0xff] %vm782_vm2, %v780_v16  ;;  %v1272_v26 = vcombine.low %v1240_v3, %v1255_v18  ;;  %v1273_v27 = vcombine.high %v1240_v3, %v1255_v18  ;;  %v2269_v28 = vcombine.high %v1198_v11, %v1205_v12 }
 0x22a   : > { %v1271_v29 = vrot.slane %v1257_v23, %v3201_v47  ;;  %v1299_v30 = vrot.slane %v1292_v24, %v3197_v38  ;;  %v1308_v31 = vcombine.low %v1214_v20, %v1221_v21  ;;  %v2270_v32 = vcombine.high %v1214_v20, %v1221_v21 }
 0x22b   : > { %v1280_v34 = vrot.slane %v1272_v26, %v3201_v47  ;;  %v1287_v35 = vrot.slane %v1273_v27, %v3201_v47  ;;  %v1307_v36 = vrot.slane %v2269_v28, %v3197_v38 }
 0x22c   : > { %v1315_v37 = vrot.slane %v1308_v31, %v3197_v38  ;;  %v1323_v39 = vrot.slane %v2270_v32, %v3197_v38  ;;  %v1342_v40 = vcombine.low %v1264_v25, %v1271_v29  ;;  %v2271_v41 = vcombine.high %v1264_v25, %v1271_v29 }
 0x22d   : > { %v1358_v42 = vcombine.low %v1280_v34, %v1287_v35  ;;  %v2272_v43 = vcombine.high %v1280_v34, %v1287_v35  ;;  %v1324_v44 = vcombine.low %v1299_v30, %v1307_v36 }
 0x22e   : > { %v1349_v45 = vrot.slane %v1342_v40, %v3197_v38  ;;  %v1357_v46 = vrot.slane %v2271_v41, %v3197_v38  ;;  %v1404_v48 = vld [vmem:[#allocation2] sm:$0xff]  ;;  %v1332_v49 = vcombine.low %v1315_v37, %v1323_v39  ;;  %v1406_v62 = vld [vmem:[#allocation2 + $0x10] sm:$0xff] }
 0x22f   : > { %v1413_v22 = vsel %vm782_vm2, %v1404_v48, 0  ;;  %v1365_v50 = vrot.slane %v1358_v42, %v3197_v38  ;;  %v1373_v51 = vrot.slane %v2272_v43, %v3197_v38  ;;  %v1331_v56 = vrot.slane %v1324_v44, %v3201_v47 }
 0x230   : > { %2354 = vmatpush3.bf16.xpose.msra.mxu1 %v1413_v22  ;;  %v1405_v52 = vld [vmem:[#allocation2 + $0x8] sm:$0xff]  ;;  %v1339_v53 = vrot.slane %v1332_v49, %v3201_v47  ;;  %v1374_v54 = vcombine.low %v1349_v45, %v1357_v46  ;;  %v1407_v3 = vld [vmem:[#allocation2 + $0x18] sm:$0xff]  ;;  %v1507_v5 = vsel %vm782_vm2, %v1406_v62, 0 }
 0x231   : > { %v1460_v55 = vsel %vm782_vm2, %v1405_v52, 0  ;;  %v1382_v57 = vcombine.low %v1365_v50, %v1373_v51  ;;  %2365 = vmatprep.subr.bf16.mxu1 %v2834_v0  ;;  %v1554_v8 = vsel %vm782_vm2, %v1407_v3, 0 }
 0x232   : > { %2360 = vmatpush3.bf16.xpose.msra.mxu0 %v1460_v55  ;;  %v1340_v58 = vcombine.low %v1331_v56, %v1339_v53  ;;  %v1381_v59 = vrot.slane %v1374_v54, %v3201_v47  ;;  %v1341_v7 = vcombine.high %v1331_v56, %v1339_v53 }
 0x233   : > { %v1389_v60 = vrot.slane %v1382_v57, %v3201_v47  ;;  %2371 = vmatprep.subr.bf16.mxu0 %v2834_v0 }
 0x234   : > { %v1395_v1 = vshrl.u32 %v1340_v58, 16  ;;  %v1401_v11 = vshrl.u32 %v1341_v7, 16 }
 0x235   : > { %v1390_v61 = vcombine.low %v1381_v59, %v1389_v60  ;;  %v1391_v4 = vcombine.high %v1381_v59, %v1389_v60 }
 0x237   : > { %v1394_v63 = vpack.i.b16 %v1390_v61, %v1340_v58  ;;  %v1396_v2 = vshrl.u32 %v1390_v61, 16  ;;  %v1402_v9 = vshrl.u32 %v1391_v4, 16  ;;  %v1400_v10 = vpack.i.b16 %v1391_v4, %v1341_v7 }
 0x239   : > { %2356 = vmatmul.mubr.msk.bf16.vlgmr.msra.gmra.mrb[0].mxu1 %vm782_vm2, %v1394_v63  ;;  %v1397_v6 = vpack.i.b16 %v1396_v2, %v1395_v1  ;;  %v1403_v12 = vpack.i.b16 %v1402_v9, %v1401_v11 }
 0x23a   : > { %2366 = vmatpush3.bf16.xpose.msra.mxu1 %v1507_v5  ;;  %2367 = vmatprep.mubr.msk.bf16.mxu1 %vm2835_vm0, %v2834_v0 }
 0x23b   : > { %2362 = vmatmul.mubr.msk.bf16.vlgmr.msra.gmra.mrb[12].mxu0 %vm782_vm2, %v1397_v6  ;;  %2377 = vmatprep.subr.bf16.mxu1 %v2834_v0 }
 0x23c   : > { %2372 = vmatpush3.bf16.xpose.msra.mxu0 %v1554_v8  ;;  %2373 = vmatprep.mubr.msk.bf16.mxu0 %vm2835_vm0, %v2834_v0 }
 0x23d   : > { %2383 = vmatprep.subr.bf16.mxu0 %v2834_v0 }
 0x241   : > { %2368 = vmatmul.mubr.msk.bf16.vlgmr.msra.gmra.mrb[4].mxu1 %vm782_vm2, %v1400_v10 }
 0x242   : > { %2379 = vmatprep.mubr.msk.bf16.mxu1 %vm2835_vm0, %v2834_v0 }
 0x243   : > { %2374 = vmatmul.mubr.msk.bf16.vlgmr.msra.gmra.mrb[16].mxu0 %vm782_vm2, %v1403_v12 }
 0x244   : > { %2385 = vmatprep.mubr.msk.bf16.mxu0 %vm2835_vm0, %v2834_v0 }
 0x30c   : > { %v1449_v13 = vpop.f32.mrb[0].mxu1 }
 0x30d   : > { %v2357_v14 = vpop.f32.mrb[1].mxu1  ;;  %v1598_v25 = vsel %vm1597_vm3, %v1449_v13, -inf }
 0x30e   : > { %v1452_v15 = vpop.f32.mrb[2].mxu1  ;;  %v1496_v16 = vpop.f32.mrb[12].mxu0 }
 0x30f   : > { %v2358_v18 = vpop.f32.mrb[3].mxu1  ;;  %v2363_v19 = vpop.f32.mrb[13].mxu0  ;;  %v1604_v20 = vsel %vm1597_vm3, %v1496_v16, -inf  ;;  %v1601_v34 = vsel %vm1597_vm3, %v1452_v15, -inf }
 0x310   : > { %1605 = vmax.xlane.f32.xlu0 %v1604_v20  ;;  %v1499_v21 = vpop.f32.mrb[14].mxu0  ;;  %v798_v19 = vshrl.u32 %v3185_v17, 16 }
 0x311   : > { %v2364_v23 = vpop.f32.mrb[15].mxu0  ;;  %v1607_v24 = vsel %vm1597_vm3, %v1499_v21, -inf }
 0x312   : > { %1608 = vmax.xlane.f32.xlu1 %v1607_v24 }
 0x314   : > { %v1543_v26 = vpop.f32.mrb[4].mxu1  ;;  %1599 = vmax.xlane.f32.xlu0 %v1598_v25 }
 0x315   : > { %v2369_v27 = vpop.f32.mrb[5].mxu1  ;;  %v1610_v28 = vsel %vm1597_vm3, %v1543_v26, -inf }
 0x316   : > { %v1546_v29 = vpop.f32.mrb[6].mxu1  ;;  %1611 = vmax.xlane.f32.xlu1 %v1610_v28  ;;  %v3295_v30 = vpop.f32.mrb[16].mxu0 }
 0x317   : > { %v2370_v31 = vpop.f32.mrb[7].mxu1  ;;  %v2375_v32 = vpop.f32.mrb[17].mxu0  ;;  %v1613_v37 = vsel %vm1597_vm3, %v1546_v29, -inf  ;;  %v1616_v40 = vsel %vm1597_vm3, %v3295_v30, -inf }
 0x318   : > { %1602 = vmax.xlane.f32.xlu0 %v1601_v34  ;;  %v1593_v35 = vpop.f32.mrb[18].mxu0 }
 0x319   : > { %v2376_v36 = vpop.f32.mrb[19].mxu0  ;;  %v1619_v39 = vsel %vm1597_vm3, %v1593_v35, -inf }
 0x31c   : > { %1614 = vmax.xlane.f32.xlu0 %v1613_v37 }
 0x320   : > { %1620 = vmax.xlane.f32.xlu0 %v1619_v39 }
 0x327   : > { %788 = vrot.lane.b32.xlu1 %v3185_v17, %s2837_s29  ;;  %s2842_s29 = smov [#allocation13]  }
 0x336   : > { %790 = vrot.lane.b32.xlu0 %v3185_v17, %s2838_s28  ;;  %s2735_s28 = sshll.u32 %s2842_s29, 4  ;;  %s2736_s28 = int_to_ptr.vmem [resolvable:$false] %s2735_s28 }
 0x337   : > { %s2737_s8 = scalar_lea.vmem %s2736_s28, 512  ;;  %p2738_p13 = scmp.lt.s32.totalorder %s3431_s16, %s2736_s28 }
 0x338   : > { %p2739_p3 = scmp.lt.s32.totalorder %s2737_s8, %s2731_s24 }
 0x33a   : > { %p2740_p5 = por %p2739_p3, %p2738_p13 }
 0x33c   : > { %p2741_p7 = pnand %p2740_p5, %p2734_p1 }
 0x34b   : > { %1617 = vmax.xlane.f32.xlu1 %v1616_v40 }
 0x35c   : > { %792 = vrot.lane.b32.xlu1 %v3185_v17, %s2836_s27  ;;  %s2077_s27 = scalar_lea.sflag [#allocation6], %s3137_s20 }
 0x39d   : > { %v1606_v41 = vpop.xlane.xlu0 %1605 }
 0x39e   : > { %v1624_v42 = vsub.f32 %v1496_v16, %v1606_v41 }
 0x39f   : > { %v1609_v43 = vpop.xlane.xlu1 %1608 }
 0x3a0   : > { %v1634_v44 = vmul.f32 1.442695, %v1624_v42  ;;  %v1625_v45 = vsub.f32 %v1499_v21, %v1609_v43 }
 0x3a1   : > { %v1600_v46 = vpop.xlane.xlu0 %1599 }
 0x3a2   : > { %2555 = vpow2.f32 %v1634_v44  ;;  %v1636_v48 = vmul.f32 1.442695, %v1625_v45  ;;  %v1622_v49 = vsub.f32 %v1449_v13, %v1600_v46 }
 0x3a3   : > { %v1612_v22 = vpop.xlane.xlu1 %1611 }
 0x3a4   : > { %2557 = vpow2.f32 %v1636_v48  ;;  %v1630_v50 = vmul.f32 1.442695, %v1622_v49  ;;  %v1626_v51 = vsub.f32 %v1543_v26, %v1612_v22 }
 0x3a5   : > { %v1603_v52 = vpop.xlane.xlu0 %1602 }
 0x3a6   : > { %2559 = vpow2.f32 %v1630_v50  ;;  %v1638_v53 = vmul.f32 1.442695, %v1626_v51  ;;  %v1623_v54 = vsub.f32 %v1452_v15, %v1603_v52 }
 0x3a7   : > { %v789_v13 = vpop.permute.xlu1 %788 }
 0x3a8   : > { %v1632_v55 = vmul.f32 1.442695, %v1623_v54  ;;  %2561 = vpow2.f32 %v1638_v53  ;;  %v796_v14 = vpack.i.b16 %v789_v13, %v3185_v17  ;;  %v799_v15 = vshrl.u32 %v789_v13, 16 }
 0x3a9   : > { %v1615_v56 = vpop.xlane.xlu0 %1614 }
 0x3aa   : > { %2563 = vpow2.f32 %v1632_v55  ;;  %v1627_v57 = vsub.f32 %v1546_v29, %v1615_v56  ;;  %v800_v23 = vpack.i.b16 %v799_v15, %v798_v19  ;;  %v810_v24 = vcombine.high %v796_v14, %v3195_v33 }
 0x3ab   : > { %v817_v29 = vrot.slane %v796_v14, %v3197_v38 }
 0x3ac   : > { %v3308_v58 = vpop.eup %2555  ;;  %v1640_v59 = vmul.f32 1.442695, %v1627_v57  ;;  %v876_v17 = vcombine.high %v800_v23, %v3195_v33  ;;  %v883_v40 = vrot.slane %v800_v23, %v3197_v38 }
 0x3ad   : > { %v1621_v60 = vpop.xlane.xlu0 %1620  ;;  %v1652_v61 = vsel %vm1597_vm3, %v3308_v58, 0.0 }
 0x3ae   : > { %v3312_v62 = vpop.eup %2557  ;;  %v1629_v63 = vsub.f32 %v1593_v35, %v1621_v60  ;;  %1653 = vadd.xlane.f32.xlu1 %v1652_v61  ;;  %2565 = vpow2.f32 %v1640_v59  ;;  %v890_v46 = vrot.slane %v876_v17, %v3197_v38 }
 0x3af   : > { %v1655_v1 = vsel %vm1597_vm3, %v3312_v62, 0.0 }
 0x3b0   : > { %v3316_v2 = vpop.eup %2559  ;;  %v1644_v3 = vmul.f32 1.442695, %v1629_v63  ;;  %1656 = vadd.xlane.f32.xlu0 %v1655_v1 }
 0x3b1   : > { %v1646_v5 = vsel %vm1597_vm3, %v3316_v2, 0.0  ;;  %v791_v20 = vpop.permute.xlu0 %790 }
 0x3b2   : > { %2567 = vpow2.f32 %v1644_v3  ;;  %v3318_v4 = vpop.eup %2561  ;;  %v806_v26 = vshrl.u32 %v791_v20, 16 }
 0x3b3   : > { %v1658_v8 = vsel %vm1597_vm3, %v3318_v4, 0.0 }
 0x3b4   : > { %v3322_v6 = vpop.eup %2563  ;;  %1647 = vadd.xlane.f32.xlu0 %v1646_v5 }
 0x3b5   : > { %v1649_v7 = vsel %vm1597_vm3, %v3322_v6, 0.0 }
 0x3b6   : > { %1650 = vadd.xlane.f32.xlu1 %v1649_v7 }
 0x3b8   : > { %1659 = vadd.xlane.f32.xlu0 %v1658_v8  ;;  %v3328_v9 = vpop.eup %2565 }
 0x3b9   : > { %v1661_v10 = vsel %vm1597_vm3, %v3328_v9, 0.0 }
 0x3ba   : > { %1662 = vadd.xlane.f32.xlu1 %v1661_v10 }
 0x3bc   : > { %v3332_v11 = vpop.eup %2567 }
 0x3bd   : > { %v1667_v12 = vsel %vm1597_vm3, %v3332_v11, 0.0 }
 0x3be   : > { %1668 = vadd.xlane.f32.xlu1 %v1667_v12 }
 0x3d8   : > { %v1618_v16 = vpop.xlane.xlu1 %1617 }
 0x3d9   : > { %v1628_v18 = vsub.f32 %v3295_v30, %v1618_v16  ;;  %v824_v30 = vrot.slane %v810_v24, %v3197_v38 }
 0x3db   : > { %v1642_v21 = vmul.f32 1.442695, %v1628_v18 }
 0x3dc   : > { %v793_v25 = vpop.permute.xlu1 %792 }
 0x3dd   : > { %2569 = vpow2.f32 %v1642_v21  ;;  %v804_v27 = vpack.i.b16 %v793_v25, %v791_v20  ;;  %v807_v28 = vshrl.u32 %v793_v25, 16 }
 0x3df   : > { %v808_v31 = vpack.i.b16 %v807_v28, %v806_v26  ;;  %v825_v32 = vcombine.high %v804_v27, %v3195_v33  ;;  %v832_v34 = vrot.slane %v804_v27, %v3197_v38 }
 0x3e1   : > { %v839_v35 = vrot.slane %v825_v32, %v3197_v38  ;;  %v840_v36 = vcombine.low %v817_v29, %v832_v34  ;;  %v841_v37 = vcombine.high %v817_v29, %v832_v34  ;;  %v891_v39 = vcombine.high %v808_v31, %v3195_v33 }
 0x3e2   : > { %v898_v41 = vrot.slane %v808_v31, %v3197_v38 }
 0x3e3   : > { %v848_v42 = vrot.slane %v840_v36, %v3201_v47  ;;  %v855_v43 = vrot.slane %v841_v37, %v3201_v47  ;;  %v856_v44 = vcombine.low %v824_v30, %v839_v35  ;;  %v857_v45 = vcombine.high %v824_v30, %v839_v35 }
 0x3e4   : > { %v905_v48 = vrot.slane %v891_v39, %v3197_v38  ;;  %v906_v49 = vcombine.low %v883_v40, %v898_v41  ;;  %v907_v22 = vcombine.high %v883_v40, %v898_v41 }
 0x3e5   : > { %v864_v50 = vrot.slane %v856_v44, %v3201_v47  ;;  %v871_v33 = vrot.slane %v857_v45, %v3201_v47  ;;  %v942_v51 = vcombine.low %v848_v42, %v855_v43  ;;  %v2261_v52 = vcombine.high %v848_v42, %v855_v43 }
 0x3e6   : > { %v914_v53 = vrot.slane %v906_v49, %v3201_v47  ;;  %v921_v54 = vrot.slane %v907_v22, %v3201_v47  ;;  %v922_v55 = vcombine.low %v890_v46, %v905_v48  ;;  %v923_v56 = vcombine.high %v890_v46, %v905_v48 }
 0x3e7   : > { %v3357_v57 = vpop.eup %2569  ;;  %v949_v59 = vrot.slane %v942_v51, %v3197_v38  ;;  %v957_v60 = vrot.slane %v2261_v52, %v3197_v38  ;;  %v958_v61 = vcombine.low %v864_v50, %v871_v33  ;;  %v2262_v63 = vcombine.high %v864_v50, %v871_v33 }
 0x3e8   : > { %v930_v1 = vrot.slane %v922_v55, %v3201_v47  ;;  %v937_v3 = vrot.slane %v923_v56, %v3201_v47  ;;  %v992_v5 = vcombine.low %v914_v53, %v921_v54  ;;  %v2263_v7 = vcombine.high %v914_v53, %v921_v54 }
 0x3e9   : > { %v965_v8 = vrot.slane %v958_v61, %v3197_v38  ;;  %v973_v10 = vrot.slane %v2262_v63, %v3197_v38  ;;  %v974_v12 = vcombine.low %v949_v59, %v957_v60  ;;  %v1664_v13 = vsel %vm1597_vm3, %v3357_v57, 0.0 }
 0x3ea   : > { %v999_v14 = vrot.slane %v992_v5, %v3197_v38  ;;  %v1007_v15 = vrot.slane %v2263_v7, %v3197_v38  ;;  %v1008_v16 = vcombine.low %v930_v1, %v937_v3  ;;  %v2264_v18 = vcombine.high %v930_v1, %v937_v3  ;;  %1665 = vadd.xlane.f32.xlu0 %v1664_v13 }
 0x3eb   : > { %v982_v19 = vcombine.low %v965_v8, %v973_v10  ;;  %v981_v24 = vrot.slane %v974_v12, %v3201_v47 }
 0x3ec   : > { %v1015_v20 = vrot.slane %v1008_v16, %v3197_v38  ;;  %v1023_v21 = vrot.slane %v2264_v18, %v3197_v38  ;;  %v1024_v23 = vcombine.low %v999_v14, %v1007_v15 }
 0x3ed   : > { %v989_v25 = vrot.slane %v982_v19, %v3201_v47 }
 0x3ee   : > { %v1032_v26 = vcombine.low %v1015_v20, %v1023_v21  ;;  %v1031_v29 = vrot.slane %v1024_v23, %v3201_v47 }
 0x3ef   : > { %v990_v27 = vcombine.low %v981_v24, %v989_v25  ;;  %v991_v28 = vcombine.high %v981_v24, %v989_v25  ;;  %v2284_v24 = vld [vmem:[%s3492_s5 + $0x8] sm:$0xf] }
 0x3f0   : > { %v1039_v31 = vrot.slane %v1032_v26, %v3201_v47 }
 0x3f1   : > { %v1046_v30 = vshrl.u32 %v990_v27, 16  ;;  %v1054_v17 = vshrl.u32 %v991_v28, 16 }
 0x3f2   : > { %v1040_v32 = vcombine.low %v1031_v29, %v1039_v31  ;;  %v1041_v34 = vcombine.high %v1031_v29, %v1039_v31 }
 0x3f4   : > { %v1044_v35 = vpack.i.b16 %v1040_v32, %v990_v27  ;;  %v1047_v36 = vshrl.u32 %v1040_v32, 16  ;;  %v1052_v37 = vpack.i.b16 %v1041_v34, %v991_v28  ;;  %v1055_v38 = vshrl.u32 %v1041_v34, 16  ;;  %v2286_v32 = vld [vmem:[%s3492_s5 + $0xc] sm:$0xf] }
 0x3f5   : > { %v1978_v27 = vsel %vm1880_vm4, %v2284_v24, 0  ;;  %v2029_v34 = vsel %vm1880_vm4, %v2286_v32, 0 }
 0x3f6   : > { %v1048_v39 = vpack.i.b16 %v1047_v36, %v1046_v30  ;;  %v1056_v40 = vpack.i.b16 %v1055_v38, %v1054_v17  ;;  %1058 = vst.msk [vmem:[#allocation3] sm:$0xff] %vm782_vm2, %v1044_v35  ;;  %1060 = vst.msk [vmem:[#allocation3 + $0x10] sm:$0xff] %vm782_vm2, %v1052_v37 }
 0x3f8   : > { %1059 = vst.msk [vmem:[#allocation3 + $0x8] sm:$0xff] %vm782_vm2, %v1048_v39  ;;  %1061 = vst.msk [vmem:[#allocation3 + $0x18] sm:$0xff] %vm782_vm2, %v1056_v40 }
 0x3fd   : > { %v1690_v41 = vld [vmem:[#allocation3] sm:$0xff] }
 0x3fe   : > { %2378 = vmatpush3.bf16.msra.mxu1 %v1690_v41 }
 0x3ff   : > { %v1691_v47 = vld [vmem:[#allocation3 + $0x8] sm:$0xff]  ;;  %2389 = vmatprep.subr.bf16.mxu1 %v2834_v0  ;;  %v1693_v53 = vld [vmem:[#allocation3 + $0x18] sm:$0xff] }
 0x400   : > { %2384 = vmatpush3.bf16.msra.mxu0 %v1691_v47 }
 0x401   : > { %2395 = vmatprep.subr.bf16.mxu0 %v2834_v0 }
 0x43b   : > { %v1654_v42 = vpop.xlane.xlu1 %1653 }
 0x43c   : > { %2571 = vrcp.f32 %v1654_v42 }
 0x43d   : > { %v1657_v43 = vpop.xlane.xlu0 %1656 }
 0x43e   : > { %2573 = vrcp.f32 %v1657_v43 }
 0x441   : > { %v1648_v44 = vpop.xlane.xlu0 %1647 }
 0x442   : > { %2575 = vrcp.f32 %v1648_v44 }
 0x443   : > { %v1651_v45 = vpop.xlane.xlu1 %1650 }
 0x444   : > { %2577 = vrcp.f32 %v1651_v45 }
 0x445   : > { %v1660_v48 = vpop.xlane.xlu0 %1659 }
 0x446   : > { %v2572_v46 = vpop.eup %2571 }
 0x447   : > { %v1663_v22 = vpop.xlane.xlu1 %1662  ;;  %v1680_v50 = vmul.f32 %v2572_v46, %v3308_v58 }
 0x448   : > { %v2574_v49 = vpop.eup %2573  ;;  %2579 = vrcp.f32 %v1663_v22 }
 0x449   : > { %v1681_v33 = vmul.f32 %v2574_v49, %v3312_v62  ;;  %2581 = vrcp.f32 %v1660_v48  ;;  %v1692_v62 = vld [vmem:[#allocation3 + $0x10] sm:$0xff] }
 0x44b   : > { %v1687_v51 = vpack.c.bf16 %v1681_v33, %v1680_v50 }
 0x44c   : > { %v2576_v52 = vpop.eup %2575 }
 0x44d   : > { %2386 = vmatmul.mubr.msk.bf16.vlgmr.msra.gmra.mrb[20].mxu0 %vm1597_vm3, %v1687_v51  ;;  %v1678_v55 = vmul.f32 %v2576_v52, %v3316_v2  ;;  %v1669_v2 = vpop.xlane.xlu1 %1668 }
 0x44e   : > { %v2578_v54 = vpop.eup %2577  ;;  %2396 = vmatpush3.bf16.msra.mxu0 %v1693_v53  ;;  %2397 = vmatprep.mubr.msk.bf16.mxu0 %vm2835_vm0, %v2834_v0  ;;  %2583 = vrcp.f32 %v1669_v2 }
 0x44f   : > { %v1679_v56 = vmul.f32 %v2578_v54, %v3322_v6 }
 0x451   : > { %v1686_v59 = vpack.c.bf16 %v1679_v56, %v1678_v55 }
 0x452   : > { %v2580_v58 = vpop.eup %2579 }
 0x453   : > { %2380 = vmatmul.mubr.msk.bf16.vlgmr.msra.gmra.mrb[8].mxu1 %vm1597_vm3, %v1686_v59  ;;  %v2582_v60 = vpop.eup %2581  ;;  %v1683_v61 = vmul.f32 %v2580_v58, %v3328_v9 }
 0x454   : > { %2390 = vmatpush3.bf16.msra.mxu1 %v1692_v62  ;;  %2391 = vmatprep.mubr.msk.bf16.mxu1 %vm2835_vm0, %v2834_v0  ;;  %v1682_v63 = vmul.f32 %v2582_v60, %v3318_v4  ;;  %v2281_v4 = vld [vmem:[%s3492_s5 + $0x4] sm:$0xf] }
 0x455   : > { %2401 = vmatprep.subr.bf16.mxu1 %v2834_v0  ;;  %v1882_v10 = vsel %vm1880_vm4, %v2281_v4, 0 }
 0x456   : > { %v1688_v1 = vpack.c.bf16 %v1683_v61, %v1682_v63 }
 0x458   : > { %v2584_v3 = vpop.eup %2583 }
 0x459   : > { %v1685_v7 = vmul.f32 %v2584_v3, %v3332_v11  ;;  %v1874_v11 = vld [vmem:[%s3492_s5] sm:$0xf] }
 0x45a   : > { %v1929_v16 = vsel %vm1880_vm4, %v1874_v11, 0 }
 0x45b   : > { %2392 = vmatmul.mubr.msk.bf16.vlgmr.msra.gmra.mrb[12].mxu1 %vm1597_vm3, %v1688_v1 }
 0x45c   : > { %2403 = vmatprep.mubr.msk.bf16.mxu1 %vm2835_vm0, %v2834_v0  ;;  %2402 = vmatpush3.bf16.msra.mxu1 %v1882_v10 }
 0x45d   : > { %2407 = vmatprep.subr.bf16.mxu1 %v2834_v0 }
 0x477   : > { %v1666_v6 = vpop.xlane.xlu0 %1665 }
 0x478   : > { %2585 = vrcp.f32 %v1666_v6 }
 0x482   : > { %v2586_v5 = vpop.eup %2585 }
 0x483   : > { %v1684_v9 = vmul.f32 %v2586_v5, %v3357_v57 }
 0x485   : > { %v1689_v8 = vpack.c.bf16 %v1685_v7, %v1684_v9 }
 0x487   : > { %2398 = vmatmul.mubr.msk.bf16.vlgmr.msra.gmra.mrb[24].mxu0 %vm1597_vm3, %v1689_v8 }
 0x520   : > { %v1775_v12 = vpop.f32.mrb[20].mxu0 }
 0x521   : > { %v2387_v13 = vpop.f32.mrb[21].mxu0 }
 0x522   : > { %v1778_v57 = vpop.f32.mrb[22].mxu0 }
 0x523   : > { %v1871_v14 = vpack.c.bf16 %v1778_v57, %v1775_v12  ;;  %v2388_v15 = vpop.f32.mrb[23].mxu0 }
 0x525   : > { %2404 = vmatmul.mubr.msk.bf16.vlgmr.msra.gmra.mrb[16].mxu1 %vm782_vm2, %v1871_v14 }
 0x526   : > { %v1731_v18 = vpop.f32.mrb[8].mxu1  ;;  %2408 = vmatpush3.bf16.msra.mxu1 %v1929_v16  ;;  %2409 = vmatprep.mubr.msk.bf16.mxu1 %vm2835_vm0, %v2834_v0 }
 0x527   : > { %v2381_v19 = vpop.f32.mrb[9].mxu1  ;;  %2413 = vmatprep.subr.bf16.mxu1 %v2834_v0 }
 0x528   : > { %v1734_v20 = vpop.f32.mrb[10].mxu1 }
 0x529   : > { %v1870_v21 = vpack.c.bf16 %v1734_v20, %v1731_v18  ;;  %v2382_v23 = vpop.f32.mrb[11].mxu1 }
 0x52e   : > { %v1819_v25 = vpop.f32.mrb[12].mxu1 }
 0x52f   : > { %v2393_v26 = vpop.f32.mrb[13].mxu1 }
 0x530   : > { %v1822_v28 = vpop.f32.mrb[14].mxu1 }
 0x531   : > { %v1872_v29 = vpack.c.bf16 %v1822_v28, %v1819_v25  ;;  %v2394_v31 = vpop.f32.mrb[15].mxu1  ;;  %2410 = vmatmul.mubr.msk.bf16.vlgmr.msra.gmra.mrb[16].mxu1 %vm782_vm2, %v1870_v21 }
 0x532   : > { %2414 = vmatpush3.bf16.msra.mxu1 %v1978_v27  ;;  %2415 = vmatprep.mubr.msk.bf16.mxu1 %vm2835_vm0, %v2834_v0 }
 0x533   : > { %2419 = vmatprep.subr.bf16.mxu1 %v2834_v0 }
 0x53d   : > { %2416 = vmatmul.mubr.msk.bf16.vlgmr.msra.gmra.mrb[16].mxu1 %vm782_vm2, %v1872_v29 }
 0x53e   : > { %2420 = vmatpush3.bf16.msra.mxu1 %v2029_v34  ;;  %2421 = vmatprep.mubr.msk.bf16.mxu1 %vm2835_vm0, %v2834_v0 }
 0x55a   : > { %v1863_v30 = vpop.f32.mrb[24].mxu0 }
 0x55b   : > { %v2399_v17 = vpop.f32.mrb[25].mxu0 }
 0x55c   : > { %v1866_v35 = vpop.f32.mrb[26].mxu0 }
 0x55d   : > { %v1873_v36 = vpack.c.bf16 %v1866_v35, %v1863_v30  ;;  %v2400_v37 = vpop.f32.mrb[27].mxu0 }
 0x55f   : > { %2422 = vmatmul.mubr.msk.bf16.vlgmr.msra.gmra.mrb[16].mxu1 %vm782_vm2, %v1873_v36 }
 0x632   : > { %v2065_v38 = vpop.f32.mrb[16].mxu1 }
 0x633   : > { %2074 = vst.msk [vmem:[%s370_s18] sm:$0xff] %vm401_vm1, %v2065_v38  ;;  %v2423_v0 = vpop.f32.mrb[17].mxu1 }
 0x634   : > { %v2068_v39 = vpop.f32.mrb[18].mxu1 }
 0x635   : > { %2075 = vst.msk [vmem:[%s370_s18 + $0x8] sm:$0xff] %vm401_vm1, %v2068_v39  ;;  %v2424_v40 = vpop.f32.mrb[19].mxu1 }
 0x636   : > { %2744 = shalt.err (!%p2741_p7)
}
 0x637   : > { %s2745_s9 = scalar_lea.hbm %s3436_s21, 256  ;;  %s2749_s14 = scalar_lea.hbm %s3493_s6, 512 }
 0x638   : > { %p2746_p12 = scmp.ne.s32.totalorder %s3436_s21, %s2745_s9  ;;  %p2750_p9 = scmp.lt.u32.totalorder %s3436_s21, %s3493_s6 }
 0x639   : > { %p2751_p0 = scmp.lt.u32.totalorder %s2749_s14, %s2745_s9  ;;  %p2753_p4 = scmp.lt.u32.totalorder %s2745_s9, %s3436_s21 }
 0x63a   : > { %p2747_p6 = pnand %p2746_p12, %p3036_p10 }
 0x63b   : > { %p2752_p2 = por %p2751_p0, %p2750_p9 }
 0x63c   : > { %p2748_p11 = pneg %p2747_p6 }
 0x63d   : > { %p2754_p8 = por %p2753_p4, %p2752_p2 }
 0x63f   : > { %p2755_p1 = pnand %p2754_p8, %p2748_p11 }
 0x641   : > { %2758 = shalt.err (!%p2755_p1)
}
 0x642   : > { %s2843_s12 = smov 128   ;;  %s2844_s0 = smov 8  }
 0x643   : > { %2453 = dma.vmem_to_hbm [thread:$0]  (%p3036_p10), %s3431_s16, 256, %s3436_s21, %s2077_s27, %s2843_s12, %s2843_s12, %s2844_s0  }
 0x644 PF: > { %s3527_s18 = sld [smem:[#allocation19_spill]]  ;;  %s3528_s2 = sld [smem:[#allocation20_spill]] }
 0x645   : > { %p3530_p3 = scmp.ge.s32.totalorder %s2825_s26, 2 }
 0x64a   : > { %s2107_s13 = sand.u32 1, %s3527_s18   ;;  %p3529_p13 = scmp.ne.s32.totalorder %s3528_s2, 0 }
 0x64b   : > { %s2108_s7 = scalar_lea.sflag [#allocation6], %s2107_s13 }
 0x64c   : > { %p2473_p5 = pnand %p3530_p3, %p3529_p13 }
 0x64e   : > { %2800 = dma.done.wait (!%p2473_p5), %s2108_s7, 256  }
 0x64f   : > { %2802 = vsyncadd (!%p2473_p5), %s2108_s7, 4294967040  ;;  %s26_s26 = sadd.s32 1, %s2825_s26   ;;  %s3531_s21 = smov %s2809_s22 }
 0x650   : > { %p23_p7 = scmp.ge.s32.totalorder %s26_s26, 4   ;;  %s3532_s22 = smov %s2813_s23 }
 0x651   : > { %s3533_s23 = smov %s3048_s19  ;;  %s3534_s24 = smov %s2821_s25 }
 0x652   : > { %s3535_s25 = smov %s3537_s10  ;;  %25 = sbr.rel (!%p23_p7) target bundleno = 13 (0xd), region = 121 }
 0x659   :  { %2113 = vsyncpa [#allocation5], 1 }
 0x65a   :  { %2115 = vsyncpa [#allocation5 + $0x1], 1 }
 0x65b   :  { %2116 = vsyncpa [#allocation8], 1 }
 0x65c   :  { %2118 = vsyncpa [#allocation8 + $0x1], 1 }
 0x65d   :  { %2119 = vsyncpa [#allocation11], 1 }
 0x65e   :  { %2120 = vsyncpa [#allocation6], 1 }
 0x65f   :  { %2122 = vsyncpa [#allocation6 + $0x1], 1 }

</bundles_post_ra>
